<compile_context>
chip_gen: v7x
topology: tpu7x:2x2x1
jax: 0.10.0
libtpu: 0.0.40
codegen_flags: <defaults>
</compile_context>

<pallas_src>
import jax
import jax.numpy as jnp
import numpy as np
from jax import lax
from jax.experimental import pallas as pl
from jax.experimental.pallas import tpu as pltpu


# ---------------------------------------------------------------------------
# Fused kernel: stacked LSTM (time loop in-kernel) + fc1 + ReLU
# ---------------------------------------------------------------------------
def _make_fused_rnn_kernel(n_layers, T, Bp, H):
    """Builds kernel(x, [w_ih, w_hh, b]*L, fc_w, fc_b, out, gx_a, gx_b).

    Weights/biases arrive with gate columns already permuted to i|f|o|g.
    """

    def kernel(*refs):
        x_ref = refs[0]
        layer_refs = refs[1:1 + 3 * n_layers]
        fc_w_ref, fc_b_ref, out_ref, gx_a, gx_b = refs[1 + 3 * n_layers:]
        gx_bufs = [gx_a, gx_b]

        # Layer 0 input projection, hoisted over ALL timesteps:
        #   (T*Bp, D) @ (D, 4H) + (1, 4H)  -- one MXU-friendly matmul.
        w_ih0_ref, _, b0_ref = layer_refs[0:3]
        gx_bufs[0][...] = (
            jnp.dot(x_ref[...], w_ih0_ref[...],
                    preferred_element_type=jnp.float32)
            + b0_ref[...]
        )

        unroll = True if T <= 8 else 8
        h_last = None
        for l in range(n_layers):
            w_hh = layer_refs[3 * l + 1][...]          # hoisted above the loop
            gx_cur = gx_bufs[l % 2]
            gx_next = gx_bufs[(l + 1) % 2]
            has_next = (l + 1) < n_layers
            if has_next:
                w_ih_next = layer_refs[3 * (l + 1)][...]       # hoisted
                b_next = layer_refs[3 * (l + 1) + 2][...]      # hoisted
            else:
                w_ih_next = None
                b_next = None

            def step(t, carry, gx_cur=gx_cur, gx_next=gx_next, w_hh=w_hh,
                     has_next=has_next, w_ih_next=w_ih_next, b_next=b_next):
                h, c = carry
                # Sublane-aligned full-tile window of the gate scratch.
                row = pl.multiple_of(t * Bp, Bp)
                gates = gx_cur[pl.ds(row, Bp), :] + jnp.dot(
                    h, w_hh, preferred_element_type=jnp.float32
                )
                # Gate order (after prep-time permutation): i | f | o | g
                sig = jax.nn.sigmoid(gates[:, :3 * H])   # one EUP pass (i,f,o)
                g_g = jnp.tanh(gates[:, 3 * H:])          # one EUP pass (g)
                i_g = sig[:, 0 * H:1 * H]
                f_g = sig[:, 1 * H:2 * H]
                o_g = sig[:, 2 * H:3 * H]
                c_new = f_g * c + i_g * g_g
                h_new = o_g * jnp.tanh(c_new)
                if has_next:
                    # Interleaved next-layer input projection (off the h-chain
                    # critical path; fills idle MXU slots).
                    gx_next[pl.ds(row, Bp), :] = (
                        jnp.dot(h_new, w_ih_next,
                                preferred_element_type=jnp.float32)
                        + b_next
                    )
                return h_new, c_new

            zeros = jnp.zeros((Bp, H), jnp.float32)
            h_last, _ = lax.fori_loop(0, T, step, (zeros, zeros),
                                      unroll=unroll)

        # fc1 + ReLU on the last timestep's hidden state (== rnn_out[:, -1, :]).
        y = (
            jnp.dot(h_last, fc_w_ref[...], preferred_element_type=jnp.float32)
            + fc_b_ref[...]
        )
        out_ref[...] = jnp.maximum(y, 0.0)

    return kernel


def rnn_fused_forward(params, x_rnn):
    """x_rnn: (B, T, D) batch-first, like PyTorch nn.LSTM(batch_first=True)."""
    lstm = params["lstm"]
    n_layers = len(lstm)
    B, T, D = x_rnn.shape
    H = lstm[0]["w_hh"].shape[0]
    F = params["fc1_w"].shape[1]

    # Pad batch to the sublane width so every per-timestep scratch slice is an
    # aligned (8, 128) tile. Padded rows carry independent (garbage) LSTM
    # state and are sliced off at the end.
    Bp = max(8, ((B + 7) // 8) * 8)

    # Time-major (T, Bp, D) -> flatten to (T*Bp, D): one tiny XLA copy so each
    # timestep is a contiguous, aligned sublane window of the VMEM scratch.
    xt = jnp.transpose(x_rnn, (1, 0, 2)).astype(jnp.float32)   # (T, B, D)
    xt = jnp.pad(xt, ((0, 0), (0, Bp - B), (0, 0)))
    x2d = xt.reshape(T * Bp, D)

    # Gate-column permutation i|f|g|o -> i|f|o|g (prep-time, not in-kernel).
    perm = jnp.concatenate([
        jnp.arange(0 * H, 1 * H),   # i
        jnp.arange(1 * H, 2 * H),   # f
        jnp.arange(3 * H, 4 * H),   # o
        jnp.arange(2 * H, 3 * H),   # g
    ])

    args = [x2d]
    in_specs = [pl.BlockSpec((T * Bp, D), lambda: (0, 0))]
    for lp in lstm:
        w_ih_p = lp["w_ih"][:, perm]
        w_hh_p = lp["w_hh"][:, perm]
        bias_p = (lp["b_ih"] + lp["b_hh"])[perm].reshape(1, 4 * H)
        args += [w_ih_p, w_hh_p, bias_p]
        in_specs += [
            pl.BlockSpec(w_ih_p.shape, lambda: (0, 0)),
            pl.BlockSpec(w_hh_p.shape, lambda: (0, 0)),
            pl.BlockSpec((1, 4 * H), lambda: (0, 0)),
        ]
    args += [params["fc1_w"], params["fc1_b"].reshape(1, F)]
    in_specs += [
        pl.BlockSpec((H, F), lambda: (0, 0)),
        pl.BlockSpec((1, F), lambda: (0, 0)),
    ]

    kernel = _make_fused_rnn_kernel(n_layers, T, Bp, H)

    out_padded = pl.pallas_call(
        kernel,
        out_shape=jax.ShapeDtypeStruct((Bp, F), jnp.float32),
        in_specs=in_specs,
        out_specs=pl.BlockSpec((Bp, F), lambda: (0, 0)),
        scratch_shapes=[
            pltpu.VMEM((T * Bp, 4 * H), jnp.float32),  # gx ping
            pltpu.VMEM((T * Bp, 4 * H), jnp.float32),  # gx pong
        ],
    )(*args)
    return out_padded[:B]


rnn_forward = jax.jit(rnn_fused_forward)


# ---------------------------------------------------------------------------
# Parameter init (matches PyTorch LSTM/Linear uniform(-1/sqrt(H), 1/sqrt(H)))
# ---------------------------------------------------------------------------
def init_params(key, cnn_embed_dim, h_rnn_layers, h_rnn, h_fc_dim):
    params = {"lstm": []}
    k = 1.0 / np.sqrt(h_rnn)
    for layer in range(h_rnn_layers):
        in_dim = cnn_embed_dim if layer == 0 else h_rnn
        key, k1, k2, k3, k4 = jax.random.split(key, 5)
        params["lstm"].append({
            # stored transposed vs PyTorch: (in, 4H) / (H, 4H), gate order i|f|g|o
            "w_ih": jax.random.uniform(k1, (in_dim, 4 * h_rnn), jnp.float32, -k, k),
            "w_hh": jax.random.uniform(k2, (h_rnn, 4 * h_rnn), jnp.float32, -k, k),
            "b_ih": jax.random.uniform(k3, (4 * h_rnn,), jnp.float32, -k, k),
            "b_hh": jax.random.uniform(k4, (4 * h_rnn,), jnp.float32, -k, k),
        })
    kf = 1.0 / np.sqrt(h_rnn)
    key, k1, k2 = jax.random.split(key, 3)
    params["fc1_w"] = jax.random.uniform(k1, (h_rnn, h_fc_dim), jnp.float32, -kf, kf)
    params["fc1_b"] = jax.random.uniform(k2, (h_fc_dim,), jnp.float32, -kf, kf)
    return params


# ---------------------------------------------------------------------------
# Pure-JAX reference (for correctness check; standard i|f|g|o gate order)
# ---------------------------------------------------------------------------
def rnn_forward_ref(params, x_rnn):
    h_seq = jnp.transpose(x_rnn, (1, 0, 2)).astype(jnp.float32)
    H = params["lstm"][0]["w_hh"].shape[0]
    for lp in params["lstm"]:
        bias = lp["b_ih"] + lp["b_hh"]

        def step(carry, x_t, lp=lp, bias=bias):
            h, c = carry
            gates = x_t @ lp["w_ih"] + h @ lp["w_hh"] + bias
            i = jax.nn.sigmoid(gates[:, 0 * H:1 * H])
            f = jax.nn.sigmoid(gates[:, 1 * H:2 * H])
            g = jnp.tanh(gates[:, 2 * H:3 * H])
            o = jax.nn.sigmoid(gates[:, 3 * H:4 * H])
            c = f * c + i * g
            h = o * jnp.tanh(c)
            return (h, c), h

        B = h_seq.shape[1]
        init = (jnp.zeros((B, H), jnp.float32), jnp.zeros((B, H), jnp.float32))
        _, h_seq = jax.lax.scan(step, init, h_seq)
    last = h_seq[-1]
    return jnp.maximum(last @ params["fc1_w"] + params["fc1_b"], 0.0)


if __name__ == "__main__":
    # RNN(CNN_embed_dim=32, h_RNN_layers=2, h_RNN=32, h_FC_dim=16,
    #     drop_p=0.3, num_classes=10)   (num_classes unused in forward)
    B, T, D = 2, 8, 32
    H_LAYERS, H_RNN, H_FC = 2, 32, 16

    key = jax.random.PRNGKey(0)
    key, pkey, xkey = jax.random.split(key, 3)
    params = init_params(pkey, D, H_LAYERS, H_RNN, H_FC)
    x = jax.random.normal(xkey, (B, T, D), jnp.float32)

    out = rnn_forward(params, x)
    jax.block_until_ready(out)

    ref = rnn_forward_ref(params, x)
    np.testing.assert_allclose(np.asarray(out), np.asarray(ref), rtol=2e-5, atol=2e-5)

    assert out.shape == (B, H_FC)
    print("KERNEL_OK")
</pallas_src>

<mosaic_0001>
module attributes {stable_mosaic.version = 11 : i64} {
  func.func @kernel(%arg0: memref<64x32xf32, #tpu.memory_space<vmem>>, %arg1: memref<32x128xf32, #tpu.memory_space<vmem>>, %arg2: memref<32x128xf32, #tpu.memory_space<vmem>>, %arg3: memref<1x128xf32, #tpu.memory_space<vmem>>, %arg4: memref<32x128xf32, #tpu.memory_space<vmem>>, %arg5: memref<32x128xf32, #tpu.memory_space<vmem>>, %arg6: memref<1x128xf32, #tpu.memory_space<vmem>>, %arg7: memref<32x16xf32, #tpu.memory_space<vmem>>, %arg8: memref<1x16xf32, #tpu.memory_space<vmem>>, %arg9: memref<8x16xf32, #tpu.memory_space<vmem>>, %arg10: memref<64x128xf32, #tpu.memory_space<vmem>>, %arg11: memref<64x128xf32, #tpu.memory_space<vmem>>) attributes {dimension_semantics = [], scalar_prefetch = 0 : i64, scratch_operands = 2 : i64, tpu.core_type = #tpu.core_type<tc>} {
    %c0 = arith.constant 0 : index
    %c0_0 = arith.constant 0 : index
    %0 = vector.load %arg0[%c0, %c0_0] : memref<64x32xf32, #tpu.memory_space<vmem>>, vector<64x32xf32>
    %c0_1 = arith.constant 0 : index
    %c0_2 = arith.constant 0 : index
    %1 = vector.load %arg1[%c0_1, %c0_2] : memref<32x128xf32, #tpu.memory_space<vmem>>, vector<32x128xf32>
    %cst = arith.constant dense<0.000000e+00> : vector<64x128xf32>
    %2 = tpu.matmul %0, %1, %cst {dimension_numbers = #tpu.dot_dimension_numbers<[1], [0], [0], [1], [0, 0, 1, 1], [], []>} : vector<64x32xf32>, vector<32x128xf32>, vector<64x128xf32> -> vector<64x128xf32>
    %c0_3 = arith.constant 0 : index
    %c0_4 = arith.constant 0 : index
    %3 = vector.load %arg3[%c0_3, %c0_4] : memref<1x128xf32, #tpu.memory_space<vmem>>, vector<1x128xf32>
    %4 = vector.broadcast %3 : vector<1x128xf32> to vector<64x128xf32>
    %5 = arith.addf %2, %4 : vector<64x128xf32>
    %c0_5 = arith.constant 0 : index
    %c0_6 = arith.constant 0 : index
    %6 = vector.load %arg10[%c0_5, %c0_6] : memref<64x128xf32, #tpu.memory_space<vmem>>, vector<64x128xf32>
    tpu.vector_store %arg10[%c0_5, %c0_6], %5 {strides = array<i32>} : memref<64x128xf32, #tpu.memory_space<vmem>>, vector<64x128xf32>,
    %c0_7 = arith.constant 0 : index
    %c0_8 = arith.constant 0 : index
    %7 = vector.load %arg2[%c0_7, %c0_8] : memref<32x128xf32, #tpu.memory_space<vmem>>, vector<32x128xf32>
    %c0_9 = arith.constant 0 : index
    %c0_10 = arith.constant 0 : index
    %8 = vector.load %arg4[%c0_9, %c0_10] : memref<32x128xf32, #tpu.memory_space<vmem>>, vector<32x128xf32>
    %c0_11 = arith.constant 0 : index
    %c0_12 = arith.constant 0 : index
    %9 = vector.load %arg6[%c0_11, %c0_12] : memref<1x128xf32, #tpu.memory_space<vmem>>, vector<1x128xf32>
    %cst_13 = arith.constant 0.000000e+00 : f32
    %10 = vector.broadcast %cst_13 : f32 to vector<8x32xf32>
    %c0_i32 = arith.constant 0 : i32
    %c8_i32 = arith.constant 8 : i32
    %11 = arith.muli %c0_i32, %c8_i32 : i32
    %12 = tpu.assume_multiple %11, 8 : i32
    %13 = arith.index_cast %12 : i32 to index
    %c0_14 = arith.constant 0 : index
    %14 = vector.load %arg10[%13, %c0_14] : memref<64x128xf32, #tpu.memory_space<vmem>>, vector<8x128xf32>
    %cst_15 = arith.constant dense<0.000000e+00> : vector<8x128xf32>
    %15 = tpu.matmul %10, %7, %cst_15 {dimension_numbers = #tpu.dot_dimension_numbers<[1], [0], [0], [1], [0, 0, 1, 1], [], []>} : vector<8x32xf32>, vector<32x128xf32>, vector<8x128xf32> -> vector<8x128xf32>
    %16 = arith.addf %14, %15 : vector<8x128xf32>
    %17 = vector.extract_strided_slice %16 {offsets = [0, 0], sizes = [8, 96], strides = [1, 1]} : vector<8x128xf32> to vector<8x96xf32>
    %18 = arith.negf %17 : vector<8x96xf32>
    %19 = math.exp %18 : vector<8x96xf32>
    %cst_16 = arith.constant 1.000000e+00 : f32
    %20 = vector.broadcast %cst_16 : f32 to vector<8x96xf32>
    %21 = arith.addf %20, %19 : vector<8x96xf32>
    %22 = arith.divf %20, %21 : vector<8x96xf32>
    %23 = vector.extract_strided_slice %16 {offsets = [0, 96], sizes = [8, 32], strides = [1, 1]} : vector<8x128xf32> to vector<8x32xf32>
    %24 = math.tanh %23 : vector<8x32xf32>
    %25 = vector.extract_strided_slice %22 {offsets = [0, 0], sizes = [8, 32], strides = [1, 1]} : vector<8x96xf32> to vector<8x32xf32>
    %26 = vector.extract_strided_slice %22 {offsets = [0, 32], sizes = [8, 32], strides = [1, 1]} : vector<8x96xf32> to vector<8x32xf32>
    %27 = vector.extract_strided_slice %22 {offsets = [0, 64], sizes = [8, 32], strides = [1, 1]} : vector<8x96xf32> to vector<8x32xf32>
    %28 = arith.mulf %26, %10 : vector<8x32xf32>
    %29 = arith.mulf %25, %24 : vector<8x32xf32>
    %30 = arith.addf %28, %29 : vector<8x32xf32>
    %31 = math.tanh %30 : vector<8x32xf32>
    %32 = arith.mulf %27, %31 : vector<8x32xf32>
    %cst_17 = arith.constant dense<0.000000e+00> : vector<8x128xf32>
    %33 = tpu.matmul %32, %8, %cst_17 {dimension_numbers = #tpu.dot_dimension_numbers<[1], [0], [0], [1], [0, 0, 1, 1], [], []>} : vector<8x32xf32>, vector<32x128xf32>, vector<8x128xf32> -> vector<8x128xf32>
    %34 = vector.broadcast %9 : vector<1x128xf32> to vector<8x128xf32>
    %35 = arith.addf %33, %34 : vector<8x128xf32>
    %36 = arith.index_cast %12 : i32 to index
    %c0_18 = arith.constant 0 : index
    %37 = vector.load %arg11[%36, %c0_18] : memref<64x128xf32, #tpu.memory_space<vmem>>, vector<8x128xf32>
    tpu.vector_store %arg11[%36, %c0_18], %35 {strides = array<i32>} : memref<64x128xf32, #tpu.memory_space<vmem>>, vector<8x128xf32>,
    %c1_i32 = arith.constant 1 : i32
    %c8_i32_19 = arith.constant 8 : i32
    %38 = arith.muli %c1_i32, %c8_i32_19 : i32
    %39 = tpu.assume_multiple %38, 8 : i32
    %40 = arith.index_cast %39 : i32 to index
    %c0_20 = arith.constant 0 : index
    %41 = vector.load %arg10[%40, %c0_20] : memref<64x128xf32, #tpu.memory_space<vmem>>, vector<8x128xf32>
    %cst_21 = arith.constant dense<0.000000e+00> : vector<8x128xf32>
    %42 = tpu.matmul %32, %7, %cst_21 {dimension_numbers = #tpu.dot_dimension_numbers<[1], [0], [0], [1], [0, 0, 1, 1], [], []>} : vector<8x32xf32>, vector<32x128xf32>, vector<8x128xf32> -> vector<8x128xf32>
    %43 = arith.addf %41, %42 : vector<8x128xf32>
    %44 = vector.extract_strided_slice %43 {offsets = [0, 0], sizes = [8, 96], strides = [1, 1]} : vector<8x128xf32> to vector<8x96xf32>
    %45 = arith.negf %44 : vector<8x96xf32>
    %46 = math.exp %45 : vector<8x96xf32>
    %cst_22 = arith.constant 1.000000e+00 : f32
    %47 = vector.broadcast %cst_22 : f32 to vector<8x96xf32>
    %48 = arith.addf %47, %46 : vector<8x96xf32>
    %49 = arith.divf %47, %48 : vector<8x96xf32>
    %50 = vector.extract_strided_slice %43 {offsets = [0, 96], sizes = [8, 32], strides = [1, 1]} : vector<8x128xf32> to vector<8x32xf32>
    %51 = math.tanh %50 : vector<8x32xf32>
    %52 = vector.extract_strided_slice %49 {offsets = [0, 0], sizes = [8, 32], strides = [1, 1]} : vector<8x96xf32> to vector<8x32xf32>
    %53 = vector.extract_strided_slice %49 {offsets = [0, 32], sizes = [8, 32], strides = [1, 1]} : vector<8x96xf32> to vector<8x32xf32>
    %54 = vector.extract_strided_slice %49 {offsets = [0, 64], sizes = [8, 32], strides = [1, 1]} : vector<8x96xf32> to vector<8x32xf32>
    %55 = arith.mulf %53, %30 : vector<8x32xf32>
    %56 = arith.mulf %52, %51 : vector<8x32xf32>
    %57 = arith.addf %55, %56 : vector<8x32xf32>
    %58 = math.tanh %57 : vector<8x32xf32>
    %59 = arith.mulf %54, %58 : vector<8x32xf32>
    %cst_23 = arith.constant dense<0.000000e+00> : vector<8x128xf32>
    %60 = tpu.matmul %59, %8, %cst_23 {dimension_numbers = #tpu.dot_dimension_numbers<[1], [0], [0], [1], [0, 0, 1, 1], [], []>} : vector<8x32xf32>, vector<32x128xf32>, vector<8x128xf32> -> vector<8x128xf32>
    %61 = vector.broadcast %9 : vector<1x128xf32> to vector<8x128xf32>
    %62 = arith.addf %60, %61 : vector<8x128xf32>
    %63 = arith.index_cast %39 : i32 to index
    %c0_24 = arith.constant 0 : index
    %64 = vector.load %arg11[%63, %c0_24] : memref<64x128xf32, #tpu.memory_space<vmem>>, vector<8x128xf32>
    tpu.vector_store %arg11[%63, %c0_24], %62 {strides = array<i32>} : memref<64x128xf32, #tpu.memory_space<vmem>>, vector<8x128xf32>,
    %c2_i32 = arith.constant 2 : i32
    %c8_i32_25 = arith.constant 8 : i32
    %65 = arith.muli %c2_i32, %c8_i32_25 : i32
    %66 = tpu.assume_multiple %65, 8 : i32
    %67 = arith.index_cast %66 : i32 to index
    %c0_26 = arith.constant 0 : index
    %68 = vector.load %arg10[%67, %c0_26] : memref<64x128xf32, #tpu.memory_space<vmem>>, vector<8x128xf32>
    %cst_27 = arith.constant dense<0.000000e+00> : vector<8x128xf32>
    %69 = tpu.matmul %59, %7, %cst_27 {dimension_numbers = #tpu.dot_dimension_numbers<[1], [0], [0], [1], [0, 0, 1, 1], [], []>} : vector<8x32xf32>, vector<32x128xf32>, vector<8x128xf32> -> vector<8x128xf32>
    %70 = arith.addf %68, %69 : vector<8x128xf32>
    %71 = vector.extract_strided_slice %70 {offsets = [0, 0], sizes = [8, 96], strides = [1, 1]} : vector<8x128xf32> to vector<8x96xf32>
    %72 = arith.negf %71 : vector<8x96xf32>
    %73 = math.exp %72 : vector<8x96xf32>
    %cst_28 = arith.constant 1.000000e+00 : f32
    %74 = vector.broadcast %cst_28 : f32 to vector<8x96xf32>
    %75 = arith.addf %74, %73 : vector<8x96xf32>
    %76 = arith.divf %74, %75 : vector<8x96xf32>
    %77 = vector.extract_strided_slice %70 {offsets = [0, 96], sizes = [8, 32], strides = [1, 1]} : vector<8x128xf32> to vector<8x32xf32>
    %78 = math.tanh %77 : vector<8x32xf32>
    %79 = vector.extract_strided_slice %76 {offsets = [0, 0], sizes = [8, 32], strides = [1, 1]} : vector<8x96xf32> to vector<8x32xf32>
    %80 = vector.extract_strided_slice %76 {offsets = [0, 32], sizes = [8, 32], strides = [1, 1]} : vector<8x96xf32> to vector<8x32xf32>
    %81 = vector.extract_strided_slice %76 {offsets = [0, 64], sizes = [8, 32], strides = [1, 1]} : vector<8x96xf32> to vector<8x32xf32>
    %82 = arith.mulf %80, %57 : vector<8x32xf32>
    %83 = arith.mulf %79, %78 : vector<8x32xf32>
    %84 = arith.addf %82, %83 : vector<8x32xf32>
    %85 = math.tanh %84 : vector<8x32xf32>
    %86 = arith.mulf %81, %85 : vector<8x32xf32>
    %cst_29 = arith.constant dense<0.000000e+00> : vector<8x128xf32>
    %87 = tpu.matmul %86, %8, %cst_29 {dimension_numbers = #tpu.dot_dimension_numbers<[1], [0], [0], [1], [0, 0, 1, 1], [], []>} : vector<8x32xf32>, vector<32x128xf32>, vector<8x128xf32> -> vector<8x128xf32>
    %88 = vector.broadcast %9 : vector<1x128xf32> to vector<8x128xf32>
    %89 = arith.addf %87, %88 : vector<8x128xf32>
    %90 = arith.index_cast %66 : i32 to index
    %c0_30 = arith.constant 0 : index
    %91 = vector.load %arg11[%90, %c0_30] : memref<64x128xf32, #tpu.memory_space<vmem>>, vector<8x128xf32>
    tpu.vector_store %arg11[%90, %c0_30], %89 {strides = array<i32>} : memref<64x128xf32, #tpu.memory_space<vmem>>, vector<8x128xf32>,
    %c3_i32 = arith.constant 3 : i32
    %c8_i32_31 = arith.constant 8 : i32
    %92 = arith.muli %c3_i32, %c8_i32_31 : i32
    %93 = tpu.assume_multiple %92, 8 : i32
    %94 = arith.index_cast %93 : i32 to index
    %c0_32 = arith.constant 0 : index
    %95 = vector.load %arg10[%94, %c0_32] : memref<64x128xf32, #tpu.memory_space<vmem>>, vector<8x128xf32>
    %cst_33 = arith.constant dense<0.000000e+00> : vector<8x128xf32>
    %96 = tpu.matmul %86, %7, %cst_33 {dimension_numbers = #tpu.dot_dimension_numbers<[1], [0], [0], [1], [0, 0, 1, 1], [], []>} : vector<8x32xf32>, vector<32x128xf32>, vector<8x128xf32> -> vector<8x128xf32>
    %97 = arith.addf %95, %96 : vector<8x128xf32>
    %98 = vector.extract_strided_slice %97 {offsets = [0, 0], sizes = [8, 96], strides = [1, 1]} : vector<8x128xf32> to vector<8x96xf32>
    %99 = arith.negf %98 : vector<8x96xf32>
    %100 = math.exp %99 : vector<8x96xf32>
    %cst_34 = arith.constant 1.000000e+00 : f32
    %101 = vector.broadcast %cst_34 : f32 to vector<8x96xf32>
    %102 = arith.addf %101, %100 : vector<8x96xf32>
    %103 = arith.divf %101, %102 : vector<8x96xf32>
    %104 = vector.extract_strided_slice %97 {offsets = [0, 96], sizes = [8, 32], strides = [1, 1]} : vector<8x128xf32> to vector<8x32xf32>
    %105 = math.tanh %104 : vector<8x32xf32>
    %106 = vector.extract_strided_slice %103 {offsets = [0, 0], sizes = [8, 32], strides = [1, 1]} : vector<8x96xf32> to vector<8x32xf32>
    %107 = vector.extract_strided_slice %103 {offsets = [0, 32], sizes = [8, 32], strides = [1, 1]} : vector<8x96xf32> to vector<8x32xf32>
    %108 = vector.extract_strided_slice %103 {offsets = [0, 64], sizes = [8, 32], strides = [1, 1]} : vector<8x96xf32> to vector<8x32xf32>
    %109 = arith.mulf %107, %84 : vector<8x32xf32>
    %110 = arith.mulf %106, %105 : vector<8x32xf32>
    %111 = arith.addf %109, %110 : vector<8x32xf32>
    %112 = math.tanh %111 : vector<8x32xf32>
    %113 = arith.mulf %108, %112 : vector<8x32xf32>
    %cst_35 = arith.constant dense<0.000000e+00> : vector<8x128xf32>
    %114 = tpu.matmul %113, %8, %cst_35 {dimension_numbers = #tpu.dot_dimension_numbers<[1], [0], [0], [1], [0, 0, 1, 1], [], []>} : vector<8x32xf32>, vector<32x128xf32>, vector<8x128xf32> -> vector<8x128xf32>
    %115 = vector.broadcast %9 : vector<1x128xf32> to vector<8x128xf32>
    %116 = arith.addf %114, %115 : vector<8x128xf32>
    %117 = arith.index_cast %93 : i32 to index
    %c0_36 = arith.constant 0 : index
    %118 = vector.load %arg11[%117, %c0_36] : memref<64x128xf32, #tpu.memory_space<vmem>>, vector<8x128xf32>
    tpu.vector_store %arg11[%117, %c0_36], %116 {strides = array<i32>} : memref<64x128xf32, #tpu.memory_space<vmem>>, vector<8x128xf32>,
    %c4_i32 = arith.constant 4 : i32
    %c8_i32_37 = arith.constant 8 : i32
    %119 = arith.muli %c4_i32, %c8_i32_37 : i32
    %120 = tpu.assume_multiple %119, 8 : i32
    %121 = arith.index_cast %120 : i32 to index
    %c0_38 = arith.constant 0 : index
    %122 = vector.load %arg10[%121, %c0_38] : memref<64x128xf32, #tpu.memory_space<vmem>>, vector<8x128xf32>
    %cst_39 = arith.constant dense<0.000000e+00> : vector<8x128xf32>
    %123 = tpu.matmul %113, %7, %cst_39 {dimension_numbers = #tpu.dot_dimension_numbers<[1], [0], [0], [1], [0, 0, 1, 1], [], []>} : vector<8x32xf32>, vector<32x128xf32>, vector<8x128xf32> -> vector<8x128xf32>
    %124 = arith.addf %122, %123 : vector<8x128xf32>
    %125 = vector.extract_strided_slice %124 {offsets = [0, 0], sizes = [8, 96], strides = [1, 1]} : vector<8x128xf32> to vector<8x96xf32>
    %126 = arith.negf %125 : vector<8x96xf32>
    %127 = math.exp %126 : vector<8x96xf32>
    %cst_40 = arith.constant 1.000000e+00 : f32
    %128 = vector.broadcast %cst_40 : f32 to vector<8x96xf32>
    %129 = arith.addf %128, %127 : vector<8x96xf32>
    %130 = arith.divf %128, %129 : vector<8x96xf32>
    %131 = vector.extract_strided_slice %124 {offsets = [0, 96], sizes = [8, 32], strides = [1, 1]} : vector<8x128xf32> to vector<8x32xf32>
    %132 = math.tanh %131 : vector<8x32xf32>
    %133 = vector.extract_strided_slice %130 {offsets = [0, 0], sizes = [8, 32], strides = [1, 1]} : vector<8x96xf32> to vector<8x32xf32>
    %134 = vector.extract_strided_slice %130 {offsets = [0, 32], sizes = [8, 32], strides = [1, 1]} : vector<8x96xf32> to vector<8x32xf32>
    %135 = vector.extract_strided_slice %130 {offsets = [0, 64], sizes = [8, 32], strides = [1, 1]} : vector<8x96xf32> to vector<8x32xf32>
    %136 = arith.mulf %134, %111 : vector<8x32xf32>
    %137 = arith.mulf %133, %132 : vector<8x32xf32>
    %138 = arith.addf %136, %137 : vector<8x32xf32>
    %139 = math.tanh %138 : vector<8x32xf32>
    %140 = arith.mulf %135, %139 : vector<8x32xf32>
    %cst_41 = arith.constant dense<0.000000e+00> : vector<8x128xf32>
    %141 = tpu.matmul %140, %8, %cst_41 {dimension_numbers = #tpu.dot_dimension_numbers<[1], [0], [0], [1], [0, 0, 1, 1], [], []>} : vector<8x32xf32>, vector<32x128xf32>, vector<8x128xf32> -> vector<8x128xf32>
    %142 = vector.broadcast %9 : vector<1x128xf32> to vector<8x128xf32>
    %143 = arith.addf %141, %142 : vector<8x128xf32>
    %144 = arith.index_cast %120 : i32 to index
    %c0_42 = arith.constant 0 : index
    %145 = vector.load %arg11[%144, %c0_42] : memref<64x128xf32, #tpu.memory_space<vmem>>, vector<8x128xf32>
    tpu.vector_store %arg11[%144, %c0_42], %143 {strides = array<i32>} : memref<64x128xf32, #tpu.memory_space<vmem>>, vector<8x128xf32>,
    %c5_i32 = arith.constant 5 : i32
    %c8_i32_43 = arith.constant 8 : i32
    %146 = arith.muli %c5_i32, %c8_i32_43 : i32
    %147 = tpu.assume_multiple %146, 8 : i32
    %148 = arith.index_cast %147 : i32 to index
    %c0_44 = arith.constant 0 : index
    %149 = vector.load %arg10[%148, %c0_44] : memref<64x128xf32, #tpu.memory_space<vmem>>, vector<8x128xf32>
    %cst_45 = arith.constant dense<0.000000e+00> : vector<8x128xf32>
    %150 = tpu.matmul %140, %7, %cst_45 {dimension_numbers = #tpu.dot_dimension_numbers<[1], [0], [0], [1], [0, 0, 1, 1], [], []>} : vector<8x32xf32>, vector<32x128xf32>, vector<8x128xf32> -> vector<8x128xf32>
    %151 = arith.addf %149, %150 : vector<8x128xf32>
    %152 = vector.extract_strided_slice %151 {offsets = [0, 0], sizes = [8, 96], strides = [1, 1]} : vector<8x128xf32> to vector<8x96xf32>
    %153 = arith.negf %152 : vector<8x96xf32>
    %154 = math.exp %153 : vector<8x96xf32>
    %cst_46 = arith.constant 1.000000e+00 : f32
    %155 = vector.broadcast %cst_46 : f32 to vector<8x96xf32>
    %156 = arith.addf %155, %154 : vector<8x96xf32>
    %157 = arith.divf %155, %156 : vector<8x96xf32>
    %158 = vector.extract_strided_slice %151 {offsets = [0, 96], sizes = [8, 32], strides = [1, 1]} : vector<8x128xf32> to vector<8x32xf32>
    %159 = math.tanh %158 : vector<8x32xf32>
    %160 = vector.extract_strided_slice %157 {offsets = [0, 0], sizes = [8, 32], strides = [1, 1]} : vector<8x96xf32> to vector<8x32xf32>
    %161 = vector.extract_strided_slice %157 {offsets = [0, 32], sizes = [8, 32], strides = [1, 1]} : vector<8x96xf32> to vector<8x32xf32>
    %162 = vector.extract_strided_slice %157 {offsets = [0, 64], sizes = [8, 32], strides = [1, 1]} : vector<8x96xf32> to vector<8x32xf32>
    %163 = arith.mulf %161, %138 : vector<8x32xf32>
    %164 = arith.mulf %160, %159 : vector<8x32xf32>
    %165 = arith.addf %163, %164 : vector<8x32xf32>
    %166 = math.tanh %165 : vector<8x32xf32>
    %167 = arith.mulf %162, %166 : vector<8x32xf32>
    %cst_47 = arith.constant dense<0.000000e+00> : vector<8x128xf32>
    %168 = tpu.matmul %167, %8, %cst_47 {dimension_numbers = #tpu.dot_dimension_numbers<[1], [0], [0], [1], [0, 0, 1, 1], [], []>} : vector<8x32xf32>, vector<32x128xf32>, vector<8x128xf32> -> vector<8x128xf32>
    %169 = vector.broadcast %9 : vector<1x128xf32> to vector<8x128xf32>
    %170 = arith.addf %168, %169 : vector<8x128xf32>
    %171 = arith.index_cast %147 : i32 to index
    %c0_48 = arith.constant 0 : index
    %172 = vector.load %arg11[%171, %c0_48] : memref<64x128xf32, #tpu.memory_space<vmem>>, vector<8x128xf32>
    tpu.vector_store %arg11[%171, %c0_48], %170 {strides = array<i32>} : memref<64x128xf32, #tpu.memory_space<vmem>>, vector<8x128xf32>,
    %c6_i32 = arith.constant 6 : i32
    %c8_i32_49 = arith.constant 8 : i32
    %173 = arith.muli %c6_i32, %c8_i32_49 : i32
    %174 = tpu.assume_multiple %173, 8 : i32
    %175 = arith.index_cast %174 : i32 to index
    %c0_50 = arith.constant 0 : index
    %176 = vector.load %arg10[%175, %c0_50] : memref<64x128xf32, #tpu.memory_space<vmem>>, vector<8x128xf32>
    %cst_51 = arith.constant dense<0.000000e+00> : vector<8x128xf32>
    %177 = tpu.matmul %167, %7, %cst_51 {dimension_numbers = #tpu.dot_dimension_numbers<[1], [0], [0], [1], [0, 0, 1, 1], [], []>} : vector<8x32xf32>, vector<32x128xf32>, vector<8x128xf32> -> vector<8x128xf32>
    %178 = arith.addf %176, %177 : vector<8x128xf32>
    %179 = vector.extract_strided_slice %178 {offsets = [0, 0], sizes = [8, 96], strides = [1, 1]} : vector<8x128xf32> to vector<8x96xf32>
    %180 = arith.negf %179 : vector<8x96xf32>
    %181 = math.exp %180 : vector<8x96xf32>
    %cst_52 = arith.constant 1.000000e+00 : f32
    %182 = vector.broadcast %cst_52 : f32 to vector<8x96xf32>
    %183 = arith.addf %182, %181 : vector<8x96xf32>
    %184 = arith.divf %182, %183 : vector<8x96xf32>
    %185 = vector.extract_strided_slice %178 {offsets = [0, 96], sizes = [8, 32], strides = [1, 1]} : vector<8x128xf32> to vector<8x32xf32>
    %186 = math.tanh %185 : vector<8x32xf32>
    %187 = vector.extract_strided_slice %184 {offsets = [0, 0], sizes = [8, 32], strides = [1, 1]} : vector<8x96xf32> to vector<8x32xf32>
    %188 = vector.extract_strided_slice %184 {offsets = [0, 32], sizes = [8, 32], strides = [1, 1]} : vector<8x96xf32> to vector<8x32xf32>
    %189 = vector.extract_strided_slice %184 {offsets = [0, 64], sizes = [8, 32], strides = [1, 1]} : vector<8x96xf32> to vector<8x32xf32>
    %190 = arith.mulf %188, %165 : vector<8x32xf32>
    %191 = arith.mulf %187, %186 : vector<8x32xf32>
    %192 = arith.addf %190, %191 : vector<8x32xf32>
    %193 = math.tanh %192 : vector<8x32xf32>
    %194 = arith.mulf %189, %193 : vector<8x32xf32>
    %cst_53 = arith.constant dense<0.000000e+00> : vector<8x128xf32>
    %195 = tpu.matmul %194, %8, %cst_53 {dimension_numbers = #tpu.dot_dimension_numbers<[1], [0], [0], [1], [0, 0, 1, 1], [], []>} : vector<8x32xf32>, vector<32x128xf32>, vector<8x128xf32> -> vector<8x128xf32>
    %196 = vector.broadcast %9 : vector<1x128xf32> to vector<8x128xf32>
    %197 = arith.addf %195, %196 : vector<8x128xf32>
    %198 = arith.index_cast %174 : i32 to index
    %c0_54 = arith.constant 0 : index
    %199 = vector.load %arg11[%198, %c0_54] : memref<64x128xf32, #tpu.memory_space<vmem>>, vector<8x128xf32>
    tpu.vector_store %arg11[%198, %c0_54], %197 {strides = array<i32>} : memref<64x128xf32, #tpu.memory_space<vmem>>, vector<8x128xf32>,
    %c7_i32 = arith.constant 7 : i32
    %c8_i32_55 = arith.constant 8 : i32
    %200 = arith.muli %c7_i32, %c8_i32_55 : i32
    %201 = tpu.assume_multiple %200, 8 : i32
    %202 = arith.index_cast %201 : i32 to index
    %c0_56 = arith.constant 0 : index
    %203 = vector.load %arg10[%202, %c0_56] : memref<64x128xf32, #tpu.memory_space<vmem>>, vector<8x128xf32>
    %cst_57 = arith.constant dense<0.000000e+00> : vector<8x128xf32>
    %204 = tpu.matmul %194, %7, %cst_57 {dimension_numbers = #tpu.dot_dimension_numbers<[1], [0], [0], [1], [0, 0, 1, 1], [], []>} : vector<8x32xf32>, vector<32x128xf32>, vector<8x128xf32> -> vector<8x128xf32>
    %205 = arith.addf %203, %204 : vector<8x128xf32>
    %206 = vector.extract_strided_slice %205 {offsets = [0, 0], sizes = [8, 96], strides = [1, 1]} : vector<8x128xf32> to vector<8x96xf32>
    %207 = arith.negf %206 : vector<8x96xf32>
    %208 = math.exp %207 : vector<8x96xf32>
    %cst_58 = arith.constant 1.000000e+00 : f32
    %209 = vector.broadcast %cst_58 : f32 to vector<8x96xf32>
    %210 = arith.addf %209, %208 : vector<8x96xf32>
    %211 = arith.divf %209, %210 : vector<8x96xf32>
    %212 = vector.extract_strided_slice %205 {offsets = [0, 96], sizes = [8, 32], strides = [1, 1]} : vector<8x128xf32> to vector<8x32xf32>
    %213 = math.tanh %212 : vector<8x32xf32>
    %214 = vector.extract_strided_slice %211 {offsets = [0, 0], sizes = [8, 32], strides = [1, 1]} : vector<8x96xf32> to vector<8x32xf32>
    %215 = vector.extract_strided_slice %211 {offsets = [0, 32], sizes = [8, 32], strides = [1, 1]} : vector<8x96xf32> to vector<8x32xf32>
    %216 = vector.extract_strided_slice %211 {offsets = [0, 64], sizes = [8, 32], strides = [1, 1]} : vector<8x96xf32> to vector<8x32xf32>
    %217 = arith.mulf %215, %192 : vector<8x32xf32>
    %218 = arith.mulf %214, %213 : vector<8x32xf32>
    %219 = arith.addf %217, %218 : vector<8x32xf32>
    %220 = math.tanh %219 : vector<8x32xf32>
    %221 = arith.mulf %216, %220 : vector<8x32xf32>
    %cst_59 = arith.constant dense<0.000000e+00> : vector<8x128xf32>
    %222 = tpu.matmul %221, %8, %cst_59 {dimension_numbers = #tpu.dot_dimension_numbers<[1], [0], [0], [1], [0, 0, 1, 1], [], []>} : vector<8x32xf32>, vector<32x128xf32>, vector<8x128xf32> -> vector<8x128xf32>
    %223 = vector.broadcast %9 : vector<1x128xf32> to vector<8x128xf32>
    %224 = arith.addf %222, %223 : vector<8x128xf32>
    %225 = arith.index_cast %201 : i32 to index
    %c0_60 = arith.constant 0 : index
    %226 = vector.load %arg11[%225, %c0_60] : memref<64x128xf32, #tpu.memory_space<vmem>>, vector<8x128xf32>
    tpu.vector_store %arg11[%225, %c0_60], %224 {strides = array<i32>} : memref<64x128xf32, #tpu.memory_space<vmem>>, vector<8x128xf32>,
    %c8_i32_61 = arith.constant 8 : i32
    %c0_62 = arith.constant 0 : index
    %c0_63 = arith.constant 0 : index
    %227 = vector.load %arg5[%c0_62, %c0_63] : memref<32x128xf32, #tpu.memory_space<vmem>>, vector<32x128xf32>
    %cst_64 = arith.constant 0.000000e+00 : f32
    %228 = vector.broadcast %cst_64 : f32 to vector<8x32xf32>
    %c0_i32_65 = arith.constant 0 : i32
    %c8_i32_66 = arith.constant 8 : i32
    %229 = arith.muli %c0_i32_65, %c8_i32_66 : i32
    %230 = tpu.assume_multiple %229, 8 : i32
    %231 = arith.index_cast %230 : i32 to index
    %c0_67 = arith.constant 0 : index
    %232 = vector.load %arg11[%231, %c0_67] : memref<64x128xf32, #tpu.memory_space<vmem>>, vector<8x128xf32>
    %cst_68 = arith.constant dense<0.000000e+00> : vector<8x128xf32>
    %233 = tpu.matmul %228, %227, %cst_68 {dimension_numbers = #tpu.dot_dimension_numbers<[1], [0], [0], [1], [0, 0, 1, 1], [], []>} : vector<8x32xf32>, vector<32x128xf32>, vector<8x128xf32> -> vector<8x128xf32>
    %234 = arith.addf %232, %233 : vector<8x128xf32>
    %235 = vector.extract_strided_slice %234 {offsets = [0, 0], sizes = [8, 96], strides = [1, 1]} : vector<8x128xf32> to vector<8x96xf32>
    %236 = arith.negf %235 : vector<8x96xf32>
    %237 = math.exp %236 : vector<8x96xf32>
    %cst_69 = arith.constant 1.000000e+00 : f32
    %238 = vector.broadcast %cst_69 : f32 to vector<8x96xf32>
    %239 = arith.addf %238, %237 : vector<8x96xf32>
    %240 = arith.divf %238, %239 : vector<8x96xf32>
    %241 = vector.extract_strided_slice %234 {offsets = [0, 96], sizes = [8, 32], strides = [1, 1]} : vector<8x128xf32> to vector<8x32xf32>
    %242 = math.tanh %241 : vector<8x32xf32>
    %243 = vector.extract_strided_slice %240 {offsets = [0, 0], sizes = [8, 32], strides = [1, 1]} : vector<8x96xf32> to vector<8x32xf32>
    %244 = vector.extract_strided_slice %240 {offsets = [0, 32], sizes = [8, 32], strides = [1, 1]} : vector<8x96xf32> to vector<8x32xf32>
    %245 = vector.extract_strided_slice %240 {offsets = [0, 64], sizes = [8, 32], strides = [1, 1]} : vector<8x96xf32> to vector<8x32xf32>
    %246 = arith.mulf %244, %228 : vector<8x32xf32>
    %247 = arith.mulf %243, %242 : vector<8x32xf32>
    %248 = arith.addf %246, %247 : vector<8x32xf32>
    %249 = math.tanh %248 : vector<8x32xf32>
    %250 = arith.mulf %245, %249 : vector<8x32xf32>
    %c1_i32_70 = arith.constant 1 : i32
    %c8_i32_71 = arith.constant 8 : i32
    %251 = arith.muli %c1_i32_70, %c8_i32_71 : i32
    %252 = tpu.assume_multiple %251, 8 : i32
    %253 = arith.index_cast %252 : i32 to index
    %c0_72 = arith.constant 0 : index
    %254 = vector.load %arg11[%253, %c0_72] : memref<64x128xf32, #tpu.memory_space<vmem>>, vector<8x128xf32>
    %cst_73 = arith.constant dense<0.000000e+00> : vector<8x128xf32>
    %255 = tpu.matmul %250, %227, %cst_73 {dimension_numbers = #tpu.dot_dimension_numbers<[1], [0], [0], [1], [0, 0, 1, 1], [], []>} : vector<8x32xf32>, vector<32x128xf32>, vector<8x128xf32> -> vector<8x128xf32>
    %256 = arith.addf %254, %255 : vector<8x128xf32>
    %257 = vector.extract_strided_slice %256 {offsets = [0, 0], sizes = [8, 96], strides = [1, 1]} : vector<8x128xf32> to vector<8x96xf32>
    %258 = arith.negf %257 : vector<8x96xf32>
    %259 = math.exp %258 : vector<8x96xf32>
    %cst_74 = arith.constant 1.000000e+00 : f32
    %260 = vector.broadcast %cst_74 : f32 to vector<8x96xf32>
    %261 = arith.addf %260, %259 : vector<8x96xf32>
    %262 = arith.divf %260, %261 : vector<8x96xf32>
    %263 = vector.extract_strided_slice %256 {offsets = [0, 96], sizes = [8, 32], strides = [1, 1]} : vector<8x128xf32> to vector<8x32xf32>
    %264 = math.tanh %263 : vector<8x32xf32>
    %265 = vector.extract_strided_slice %262 {offsets = [0, 0], sizes = [8, 32], strides = [1, 1]} : vector<8x96xf32> to vector<8x32xf32>
    %266 = vector.extract_strided_slice %262 {offsets = [0, 32], sizes = [8, 32], strides = [1, 1]} : vector<8x96xf32> to vector<8x32xf32>
    %267 = vector.extract_strided_slice %262 {offsets = [0, 64], sizes = [8, 32], strides = [1, 1]} : vector<8x96xf32> to vector<8x32xf32>
    %268 = arith.mulf %266, %248 : vector<8x32xf32>
    %269 = arith.mulf %265, %264 : vector<8x32xf32>
    %270 = arith.addf %268, %269 : vector<8x32xf32>
    %271 = math.tanh %270 : vector<8x32xf32>
    %272 = arith.mulf %267, %271 : vector<8x32xf32>
    %c2_i32_75 = arith.constant 2 : i32
    %c8_i32_76 = arith.constant 8 : i32
    %273 = arith.muli %c2_i32_75, %c8_i32_76 : i32
    %274 = tpu.assume_multiple %273, 8 : i32
    %275 = arith.index_cast %274 : i32 to index
    %c0_77 = arith.constant 0 : index
    %276 = vector.load %arg11[%275, %c0_77] : memref<64x128xf32, #tpu.memory_space<vmem>>, vector<8x128xf32>
    %cst_78 = arith.constant dense<0.000000e+00> : vector<8x128xf32>
    %277 = tpu.matmul %272, %227, %cst_78 {dimension_numbers = #tpu.dot_dimension_numbers<[1], [0], [0], [1], [0, 0, 1, 1], [], []>} : vector<8x32xf32>, vector<32x128xf32>, vector<8x128xf32> -> vector<8x128xf32>
    %278 = arith.addf %276, %277 : vector<8x128xf32>
    %279 = vector.extract_strided_slice %278 {offsets = [0, 0], sizes = [8, 96], strides = [1, 1]} : vector<8x128xf32> to vector<8x96xf32>
    %280 = arith.negf %279 : vector<8x96xf32>
    %281 = math.exp %280 : vector<8x96xf32>
    %cst_79 = arith.constant 1.000000e+00 : f32
    %282 = vector.broadcast %cst_79 : f32 to vector<8x96xf32>
    %283 = arith.addf %282, %281 : vector<8x96xf32>
    %284 = arith.divf %282, %283 : vector<8x96xf32>
    %285 = vector.extract_strided_slice %278 {offsets = [0, 96], sizes = [8, 32], strides = [1, 1]} : vector<8x128xf32> to vector<8x32xf32>
    %286 = math.tanh %285 : vector<8x32xf32>
    %287 = vector.extract_strided_slice %284 {offsets = [0, 0], sizes = [8, 32], strides = [1, 1]} : vector<8x96xf32> to vector<8x32xf32>
    %288 = vector.extract_strided_slice %284 {offsets = [0, 32], sizes = [8, 32], strides = [1, 1]} : vector<8x96xf32> to vector<8x32xf32>
    %289 = vector.extract_strided_slice %284 {offsets = [0, 64], sizes = [8, 32], strides = [1, 1]} : vector<8x96xf32> to vector<8x32xf32>
    %290 = arith.mulf %288, %270 : vector<8x32xf32>
    %291 = arith.mulf %287, %286 : vector<8x32xf32>
    %292 = arith.addf %290, %291 : vector<8x32xf32>
    %293 = math.tanh %292 : vector<8x32xf32>
    %294 = arith.mulf %289, %293 : vector<8x32xf32>
    %c3_i32_80 = arith.constant 3 : i32
    %c8_i32_81 = arith.constant 8 : i32
    %295 = arith.muli %c3_i32_80, %c8_i32_81 : i32
    %296 = tpu.assume_multiple %295, 8 : i32
    %297 = arith.index_cast %296 : i32 to index
    %c0_82 = arith.constant 0 : index
    %298 = vector.load %arg11[%297, %c0_82] : memref<64x128xf32, #tpu.memory_space<vmem>>, vector<8x128xf32>
    %cst_83 = arith.constant dense<0.000000e+00> : vector<8x128xf32>
    %299 = tpu.matmul %294, %227, %cst_83 {dimension_numbers = #tpu.dot_dimension_numbers<[1], [0], [0], [1], [0, 0, 1, 1], [], []>} : vector<8x32xf32>, vector<32x128xf32>, vector<8x128xf32> -> vector<8x128xf32>
    %300 = arith.addf %298, %299 : vector<8x128xf32>
    %301 = vector.extract_strided_slice %300 {offsets = [0, 0], sizes = [8, 96], strides = [1, 1]} : vector<8x128xf32> to vector<8x96xf32>
    %302 = arith.negf %301 : vector<8x96xf32>
    %303 = math.exp %302 : vector<8x96xf32>
    %cst_84 = arith.constant 1.000000e+00 : f32
    %304 = vector.broadcast %cst_84 : f32 to vector<8x96xf32>
    %305 = arith.addf %304, %303 : vector<8x96xf32>
    %306 = arith.divf %304, %305 : vector<8x96xf32>
    %307 = vector.extract_strided_slice %300 {offsets = [0, 96], sizes = [8, 32], strides = [1, 1]} : vector<8x128xf32> to vector<8x32xf32>
    %308 = math.tanh %307 : vector<8x32xf32>
    %309 = vector.extract_strided_slice %306 {offsets = [0, 0], sizes = [8, 32], strides = [1, 1]} : vector<8x96xf32> to vector<8x32xf32>
    %310 = vector.extract_strided_slice %306 {offsets = [0, 32], sizes = [8, 32], strides = [1, 1]} : vector<8x96xf32> to vector<8x32xf32>
    %311 = vector.extract_strided_slice %306 {offsets = [0, 64], sizes = [8, 32], strides = [1, 1]} : vector<8x96xf32> to vector<8x32xf32>
    %312 = arith.mulf %310, %292 : vector<8x32xf32>
    %313 = arith.mulf %309, %308 : vector<8x32xf32>
    %314 = arith.addf %312, %313 : vector<8x32xf32>
    %315 = math.tanh %314 : vector<8x32xf32>
    %316 = arith.mulf %311, %315 : vector<8x32xf32>
    %c4_i32_85 = arith.constant 4 : i32
    %c8_i32_86 = arith.constant 8 : i32
    %317 = arith.muli %c4_i32_85, %c8_i32_86 : i32
    %318 = tpu.assume_multiple %317, 8 : i32
    %319 = arith.index_cast %318 : i32 to index
    %c0_87 = arith.constant 0 : index
    %320 = vector.load %arg11[%319, %c0_87] : memref<64x128xf32, #tpu.memory_space<vmem>>, vector<8x128xf32>
    %cst_88 = arith.constant dense<0.000000e+00> : vector<8x128xf32>
    %321 = tpu.matmul %316, %227, %cst_88 {dimension_numbers = #tpu.dot_dimension_numbers<[1], [0], [0], [1], [0, 0, 1, 1], [], []>} : vector<8x32xf32>, vector<32x128xf32>, vector<8x128xf32> -> vector<8x128xf32>
    %322 = arith.addf %320, %321 : vector<8x128xf32>
    %323 = vector.extract_strided_slice %322 {offsets = [0, 0], sizes = [8, 96], strides = [1, 1]} : vector<8x128xf32> to vector<8x96xf32>
    %324 = arith.negf %323 : vector<8x96xf32>
    %325 = math.exp %324 : vector<8x96xf32>
    %cst_89 = arith.constant 1.000000e+00 : f32
    %326 = vector.broadcast %cst_89 : f32 to vector<8x96xf32>
    %327 = arith.addf %326, %325 : vector<8x96xf32>
    %328 = arith.divf %326, %327 : vector<8x96xf32>
    %329 = vector.extract_strided_slice %322 {offsets = [0, 96], sizes = [8, 32], strides = [1, 1]} : vector<8x128xf32> to vector<8x32xf32>
    %330 = math.tanh %329 : vector<8x32xf32>
    %331 = vector.extract_strided_slice %328 {offsets = [0, 0], sizes = [8, 32], strides = [1, 1]} : vector<8x96xf32> to vector<8x32xf32>
    %332 = vector.extract_strided_slice %328 {offsets = [0, 32], sizes = [8, 32], strides = [1, 1]} : vector<8x96xf32> to vector<8x32xf32>
    %333 = vector.extract_strided_slice %328 {offsets = [0, 64], sizes = [8, 32], strides = [1, 1]} : vector<8x96xf32> to vector<8x32xf32>
    %334 = arith.mulf %332, %314 : vector<8x32xf32>
    %335 = arith.mulf %331, %330 : vector<8x32xf32>
    %336 = arith.addf %334, %335 : vector<8x32xf32>
    %337 = math.tanh %336 : vector<8x32xf32>
    %338 = arith.mulf %333, %337 : vector<8x32xf32>
    %c5_i32_90 = arith.constant 5 : i32
    %c8_i32_91 = arith.constant 8 : i32
    %339 = arith.muli %c5_i32_90, %c8_i32_91 : i32
    %340 = tpu.assume_multiple %339, 8 : i32
    %341 = arith.index_cast %340 : i32 to index
    %c0_92 = arith.constant 0 : index
    %342 = vector.load %arg11[%341, %c0_92] : memref<64x128xf32, #tpu.memory_space<vmem>>, vector<8x128xf32>
    %cst_93 = arith.constant dense<0.000000e+00> : vector<8x128xf32>
    %343 = tpu.matmul %338, %227, %cst_93 {dimension_numbers = #tpu.dot_dimension_numbers<[1], [0], [0], [1], [0, 0, 1, 1], [], []>} : vector<8x32xf32>, vector<32x128xf32>, vector<8x128xf32> -> vector<8x128xf32>
    %344 = arith.addf %342, %343 : vector<8x128xf32>
    %345 = vector.extract_strided_slice %344 {offsets = [0, 0], sizes = [8, 96], strides = [1, 1]} : vector<8x128xf32> to vector<8x96xf32>
    %346 = arith.negf %345 : vector<8x96xf32>
    %347 = math.exp %346 : vector<8x96xf32>
    %cst_94 = arith.constant 1.000000e+00 : f32
    %348 = vector.broadcast %cst_94 : f32 to vector<8x96xf32>
    %349 = arith.addf %348, %347 : vector<8x96xf32>
    %350 = arith.divf %348, %349 : vector<8x96xf32>
    %351 = vector.extract_strided_slice %344 {offsets = [0, 96], sizes = [8, 32], strides = [1, 1]} : vector<8x128xf32> to vector<8x32xf32>
    %352 = math.tanh %351 : vector<8x32xf32>
    %353 = vector.extract_strided_slice %350 {offsets = [0, 0], sizes = [8, 32], strides = [1, 1]} : vector<8x96xf32> to vector<8x32xf32>
    %354 = vector.extract_strided_slice %350 {offsets = [0, 32], sizes = [8, 32], strides = [1, 1]} : vector<8x96xf32> to vector<8x32xf32>
    %355 = vector.extract_strided_slice %350 {offsets = [0, 64], sizes = [8, 32], strides = [1, 1]} : vector<8x96xf32> to vector<8x32xf32>
    %356 = arith.mulf %354, %336 : vector<8x32xf32>
    %357 = arith.mulf %353, %352 : vector<8x32xf32>
    %358 = arith.addf %356, %357 : vector<8x32xf32>
    %359 = math.tanh %358 : vector<8x32xf32>
    %360 = arith.mulf %355, %359 : vector<8x32xf32>
    %c6_i32_95 = arith.constant 6 : i32
    %c8_i32_96 = arith.constant 8 : i32
    %361 = arith.muli %c6_i32_95, %c8_i32_96 : i32
    %362 = tpu.assume_multiple %361, 8 : i32
    %363 = arith.index_cast %362 : i32 to index
    %c0_97 = arith.constant 0 : index
    %364 = vector.load %arg11[%363, %c0_97] : memref<64x128xf32, #tpu.memory_space<vmem>>, vector<8x128xf32>
    %cst_98 = arith.constant dense<0.000000e+00> : vector<8x128xf32>
    %365 = tpu.matmul %360, %227, %cst_98 {dimension_numbers = #tpu.dot_dimension_numbers<[1], [0], [0], [1], [0, 0, 1, 1], [], []>} : vector<8x32xf32>, vector<32x128xf32>, vector<8x128xf32> -> vector<8x128xf32>
    %366 = arith.addf %364, %365 : vector<8x128xf32>
    %367 = vector.extract_strided_slice %366 {offsets = [0, 0], sizes = [8, 96], strides = [1, 1]} : vector<8x128xf32> to vector<8x96xf32>
    %368 = arith.negf %367 : vector<8x96xf32>
    %369 = math.exp %368 : vector<8x96xf32>
    %cst_99 = arith.constant 1.000000e+00 : f32
    %370 = vector.broadcast %cst_99 : f32 to vector<8x96xf32>
    %371 = arith.addf %370, %369 : vector<8x96xf32>
    %372 = arith.divf %370, %371 : vector<8x96xf32>
    %373 = vector.extract_strided_slice %366 {offsets = [0, 96], sizes = [8, 32], strides = [1, 1]} : vector<8x128xf32> to vector<8x32xf32>
    %374 = math.tanh %373 : vector<8x32xf32>
    %375 = vector.extract_strided_slice %372 {offsets = [0, 0], sizes = [8, 32], strides = [1, 1]} : vector<8x96xf32> to vector<8x32xf32>
    %376 = vector.extract_strided_slice %372 {offsets = [0, 32], sizes = [8, 32], strides = [1, 1]} : vector<8x96xf32> to vector<8x32xf32>
    %377 = vector.extract_strided_slice %372 {offsets = [0, 64], sizes = [8, 32], strides = [1, 1]} : vector<8x96xf32> to vector<8x32xf32>
    %378 = arith.mulf %376, %358 : vector<8x32xf32>
    %379 = arith.mulf %375, %374 : vector<8x32xf32>
    %380 = arith.addf %378, %379 : vector<8x32xf32>
    %381 = math.tanh %380 : vector<8x32xf32>
    %382 = arith.mulf %377, %381 : vector<8x32xf32>
    %c7_i32_100 = arith.constant 7 : i32
    %c8_i32_101 = arith.constant 8 : i32
    %383 = arith.muli %c7_i32_100, %c8_i32_101 : i32
    %384 = tpu.assume_multiple %383, 8 : i32
    %385 = arith.index_cast %384 : i32 to index
    %c0_102 = arith.constant 0 : index
    %386 = vector.load %arg11[%385, %c0_102] : memref<64x128xf32, #tpu.memory_space<vmem>>, vector<8x128xf32>
    %cst_103 = arith.constant dense<0.000000e+00> : vector<8x128xf32>
    %387 = tpu.matmul %382, %227, %cst_103 {dimension_numbers = #tpu.dot_dimension_numbers<[1], [0], [0], [1], [0, 0, 1, 1], [], []>} : vector<8x32xf32>, vector<32x128xf32>, vector<8x128xf32> -> vector<8x128xf32>
    %388 = arith.addf %386, %387 : vector<8x128xf32>
    %389 = vector.extract_strided_slice %388 {offsets = [0, 0], sizes = [8, 96], strides = [1, 1]} : vector<8x128xf32> to vector<8x96xf32>
    %390 = arith.negf %389 : vector<8x96xf32>
    %391 = math.exp %390 : vector<8x96xf32>
    %cst_104 = arith.constant 1.000000e+00 : f32
    %392 = vector.broadcast %cst_104 : f32 to vector<8x96xf32>
    %393 = arith.addf %392, %391 : vector<8x96xf32>
    %394 = arith.divf %392, %393 : vector<8x96xf32>
    %395 = vector.extract_strided_slice %388 {offsets = [0, 96], sizes = [8, 32], strides = [1, 1]} : vector<8x128xf32> to vector<8x32xf32>
    %396 = math.tanh %395 : vector<8x32xf32>
    %397 = vector.extract_strided_slice %394 {offsets = [0, 0], sizes = [8, 32], strides = [1, 1]} : vector<8x96xf32> to vector<8x32xf32>
    %398 = vector.extract_strided_slice %394 {offsets = [0, 32], sizes = [8, 32], strides = [1, 1]} : vector<8x96xf32> to vector<8x32xf32>
    %399 = vector.extract_strided_slice %394 {offsets = [0, 64], sizes = [8, 32], strides = [1, 1]} : vector<8x96xf32> to vector<8x32xf32>
    %400 = arith.mulf %398, %380 : vector<8x32xf32>
    %401 = arith.mulf %397, %396 : vector<8x32xf32>
    %402 = arith.addf %400, %401 : vector<8x32xf32>
    %403 = math.tanh %402 : vector<8x32xf32>
    %404 = arith.mulf %399, %403 : vector<8x32xf32>
    %c8_i32_105 = arith.constant 8 : i32
    %c0_106 = arith.constant 0 : index
    %c0_107 = arith.constant 0 : index
    %405 = vector.load %arg7[%c0_106, %c0_107] : memref<32x16xf32, #tpu.memory_space<vmem>>, vector<32x16xf32>
    %cst_108 = arith.constant dense<0.000000e+00> : vector<8x16xf32>
    %406 = tpu.matmul %404, %405, %cst_108 {dimension_numbers = #tpu.dot_dimension_numbers<[1], [0], [0], [1], [0, 0, 1, 1], [], []>} : vector<8x32xf32>, vector<32x16xf32>, vector<8x16xf32> -> vector<8x16xf32>
    %c0_109 = arith.constant 0 : index
    %c0_110 = arith.constant 0 : index
    %407 = vector.load %arg8[%c0_109, %c0_110] : memref<1x16xf32, #tpu.memory_space<vmem>>, vector<1x16xf32>
    %408 = vector.broadcast %407 : vector<1x16xf32> to vector<8x16xf32>
    %409 = arith.addf %406, %408 : vector<8x16xf32>
    %cst_111 = arith.constant 0.000000e+00 : f32
    %410 = vector.broadcast %cst_111 : f32 to vector<8x16xf32>
    %411 = arith.maximumf %409, %410 : vector<8x16xf32>
    %c0_112 = arith.constant 0 : index
    %c0_113 = arith.constant 0 : index
    %412 = vector.load %arg9[%c0_112, %c0_113] : memref<8x16xf32, #tpu.memory_space<vmem>>, vector<8x16xf32>
    tpu.vector_store %arg9[%c0_112, %c0_113], %411 {strides = array<i32>} : memref<8x16xf32, #tpu.memory_space<vmem>>, vector<8x16xf32>,
    return
  }
}

</mosaic_0001>

<bundles_post_ra>
// kernel: rnn_fused_forward.1
= control target key start
LH: loop header
LB: loop body
LE: loop exit
PB: predicated region body
PF: predicated region fallthrough
CT: control target
= control target key end

     0   :  { %vm51_vm0 = vcmask 261120   ;;  %v3292_v3 = vmov 0.0|0.0   ;;  %vm3293_vm1 = vmmov 0   ;;  %v3294_v4 = vmov 0.0   ;;  %s3737_s1 = inlined_call_operand.vmem [shape: f32[32,128], index: 1, kind: input, shape index: {}]   ;;  %s3738_s0 = inlined_call_operand.vmem [shape: f32[64,32], index: 0, kind: input, shape index: {}]   ;;  %s3739_s2 = inlined_call_operand.vmem [shape: f32[32,128], index: 2, kind: input, shape index: {}]   ;;  %s3740_s3 = inlined_call_operand.vmem [shape: f32[1,128], index: 3, kind: input, shape index: {}]   ;;  %s3741_s4 = inlined_call_operand.vmem [shape: f32[32,128], index: 4, kind: input, shape index: {}]   ;;  %s3742_s5 = inlined_call_operand.vmem [shape: f32[32,128], index: 5, kind: input, shape index: {}]   ;;  %s3743_s6 = inlined_call_operand.vmem [shape: f32[1,128], index: 6, kind: input, shape index: {}]   ;;  %s3744_s7 = inlined_call_operand.vmem [shape: f32[32,16], index: 7, kind: input, shape index: {}]   ;;  %s3745_s8 = inlined_call_operand.vmem [shape: f32[1,16], index: 8, kind: input, shape index: {}]   ;;  %s3746_s9 = inlined_call_operand.vmem [shape: f32[8,16], index: 9, kind: output, shape index: {}]  }
   0x1   :  { %v40_v0 = vld [vmem:[%s3737_s1] sm:$0xff]  ;;  %v41_v1 = vld [vmem:[%s3737_s1 + $0x8] sm:$0xff]  ;;  %v42_v2 = vld [vmem:[%s3737_s1 + $0x10] sm:$0xff]  ;;  %3017 = vmatprep.subr.bf16.mxu1 %v3292_v3  ;;  %2767 = vmatprep.mubr.msk.f32.mxu1 %vm3293_vm1, %v3294_v4  ;;  %vm2491_vm2 = vcmask 130048  }
   0x2   :  { %v2979_v5 = vpack.c.bf16 %v41_v1, %v40_v0  ;;  %v43_v6 = vld [vmem:[%s3737_s1 + $0x18] sm:$0xff]  ;;  %v32_v7 = vld [vmem:[%s3738_s0] sm:$0xff]  ;;  %v190_v10 = vld [vmem:[%s3739_s2 + $0x8] sm:$0xff] }
   0x3   :  { %v2983_v8 = vpack.c.bf16 %v43_v6, %v42_v2  ;;  %2692 = vmatprep.mubr.msk.f32.mxu0 %vm51_vm0, %v32_v7  ;;  %v189_v9 = vld [vmem:[%s3739_s2] sm:$0xff]  ;;  %v33_v11 = vld [vmem:[%s3738_s0 + $0x8] sm:$0xff]  ;;  %v34_v13 = vld [vmem:[%s3738_s0 + $0x10] sm:$0xff] }
   0x4   :  { %2980 = vmatprep.subr.bf16.mxu0 %v2979_v5  ;;  %v3375_v12 = vpack.c.bf16 %v190_v10, %v189_v9  ;;  %v191_v14 = vld [vmem:[%s3739_s2 + $0x10] sm:$0xff]  ;;  %v192_v15 = vld [vmem:[%s3739_s2 + $0x18] sm:$0xff]  ;;  %v36_v18 = vld [vmem:[%s3738_s0 + $0x20] sm:$0xff] }
   0x5   :  { %2982 = vmatpush3.bf16.msra.mxu0 %v2979_v5  ;;  %v35_v16 = vld [vmem:[%s3738_s0 + $0x18] sm:$0xff]  ;;  %v3393_v17 = vpack.c.bf16 %v192_v15, %v191_v14  ;;  %v37_v19 = vld [vmem:[%s3738_s0 + $0x28] sm:$0xff]  ;;  %v38_v20 = vld [vmem:[%s3738_s0 + $0x30] sm:$0xff] }
   0x6   :  { %2984 = vmatprep.subr.bf16.mxu0 %v2983_v8  ;;  %v39_v21 = vld [vmem:[%s3738_s0 + $0x38] sm:$0xff]  ;;  %v2497_v22 = vld [vmem:[%s3740_s3] ss:$0 sm:$0xff]  ;;  %s3295_s0 = smov 32   ;;  %v194_v53 = vld [vmem:[%s3741_s4 + $0x8] sm:$0xff] }
   0x7   :  { %v193_v52 = vld [vmem:[%s3741_s4] sm:$0xff]  ;;  %v195_v54 = vld [vmem:[%s3741_s4 + $0x10] sm:$0xff]  ;;  %v196_v56 = vld [vmem:[%s3741_s4 + $0x18] sm:$0xff]  ;;  %s3296_s4 = smov 64  }
   0x8   :  { %v3448_v55 = vpack.c.bf16 %v194_v53, %v193_v52  ;;  %v3454_v57 = vpack.c.bf16 %v196_v56, %v195_v54 }
   0x9   :  { %2986 = vmatpush3.bf16.msra.mxu0 %v2983_v8 }
   0xa   :  { %2987 = vmatprep.subr.bf16.mxu0 %v3292_v3  ;;  %3019 = vmatpush3.bf16.msra.mxu1 %v3448_v55 }
   0xb   :  { %3020 = vmatprep.subr.bf16.mxu1 %v3292_v3 }
   0xc   :  { %2693 = vmatmul.mubr.msk.f32.vlgmr.msra.gmra.mrb[0].mxu0 %vm51_vm0, %v33_v11 }
   0xd   :  { %2989 = vmatpush3.bf16.msra.mxu0 %v3375_v12  ;;  %2695 = vmatprep.mubr.msk.f32.mxu0 %vm51_vm0, %v34_v13 }
   0xe   :  { %2990 = vmatprep.subr.bf16.mxu0 %v3292_v3  ;;  %3022 = vmatpush3.bf16.msra.mxu1 %v3454_v57 }
   0xf   :  { %3029 = vmatprep.subr.bf16.mxu1 %v3292_v3 }
  0x10   :  { %2696 = vmatmul.mubr.msk.f32.gmra.mrb[2].mxu0 %vm51_vm0, %v35_v16 }
  0x11   :  { %2698 = vmatprep.mubr.msk.f32.mxu0 %vm51_vm0, %v36_v18  ;;  %2992 = vmatpush3.bf16.msra.mxu0 %v3393_v17 }
  0x12   :  { %2993 = vmatprep.subr.bf16.mxu0 %v3292_v3 }
  0x14   :  { %2699 = vmatmul.mubr.msk.f32.gmra.mrb[4].mxu0 %vm51_vm0, %v37_v19 }
  0x15   :  { %2701 = vmatprep.mubr.msk.f32.mxu0 %vm51_vm0, %v38_v20 }
  0x18   :  { %2702 = vmatmul.mubr.msk.f32.gmra.mrb[6].mxu0 %vm51_vm0, %v39_v21 }
  0x19   :  { %2712 = vmatprep.mubr.msk.f32.mxu0 %vm3293_vm1, %v3294_v4 }
  0x1c   :  { %2713 = vmatmul.mubr.f32.vlgmr.msra.gmra.mrb[8].mxu0 %v3294_v4 }
  0x1d   :  { %2723 = vmatprep.mubr.msk.f32.mxu0 %vm3293_vm1, %v3294_v4  ;;  %2995 = vmatpush3.bf16.msra.mxu0 %v3448_v55 }
  0x1e   :  { %2996 = vmatprep.subr.bf16.mxu0 %v3292_v3 }
  0x21   :  { %2998 = vmatpush3.bf16.msra.mxu0 %v3454_v57 }
  0x22   :  { %2999 = vmatprep.subr.bf16.mxu0 %v3292_v3 }
  0xdf   :  { %v2694_v23 = vpop.f32.mrb[0].mxu0 }
  0xe0   :  { %v3423_v24 = vadd.f32 %v2694_v23, %v2497_v22  ;;  %v142_v25 = vpop.f32.mrb[1].mxu0 }
  0xe1   :  { %v143_v38 = vadd.f32 %v2497_v22, %v142_v25 }
  0xe3   :  { %v2697_v26 = vpop.f32.mrb[2].mxu0 }
  0xe4   :  { %v3425_v27 = vadd.f32 %v2697_v26, %v2497_v22  ;;  %v152_v28 = vpop.f32.mrb[3].mxu0 }
  0xe5   :  { %v3427_v29 = vadd.f32 %v2497_v22, %v152_v28 }
  0xe7   :  { %v2700_v30 = vpop.f32.mrb[4].mxu0 }
  0xe8   :  { %v3429_v31 = vadd.f32 %v2700_v30, %v2497_v22  ;;  %v162_v32 = vpop.f32.mrb[5].mxu0 }
  0xe9   :  { %v3431_v33 = vadd.f32 %v2497_v22, %v162_v32 }
  0xeb   :  { %v2703_v34 = vpop.f32.mrb[6].mxu0 }
  0xec   :  { %v3433_v35 = vadd.f32 %v2703_v34, %v2497_v22  ;;  %v172_v36 = vpop.f32.mrb[7].mxu0 }
  0xed   :  { %v3435_v37 = vadd.f32 %v2497_v22, %v172_v36 }
  0xef   :  { %v268_v39 = vpop.f32.mrb[8].mxu0 }
  0xf0   :  { %v272_v40 = vadd.f32 %v268_v39, %v143_v38  ;;  %v2714_v41 = vpop.f32.mrb[9].mxu0 }
  0xf2   :  { %3164 = vtanh.f32 %v272_v40  ;;  %v2506_v43 = vmul.f32 -1.442695, %v272_v40 }
  0xf4   :  { %3166 = vpow2.f32 %v2506_v43 }
  0xfc   :  { %v3165_v42 = vpop.eup %3164 }
  0xfd   :  { %282 = vrot.lane.b32.xlu0 %v3165_v42, %s3295_s0 }
  0xfe   :  { %v3167_v44 = vpop.eup %3166 }
  0xff   :  { %v276_v45 = vadd.f32 1.0, %v3167_v44 }
 0x101   :  { %3168 = vrcp.f32 %v276_v45 }
 0x10b   :  { %v3169_v46 = vpop.eup %3168 }
 0x10c   :  { %v280_v49 = vmul.f32 0.0, %v3169_v46 }
 0x16f   :  { %v283_v47 = vpop.permute.xlu0 %282 }
 0x170   :  { %v285_v48 = vmul.f32 %v3169_v46, %v283_v47 }
 0x172   :  { %287 = vrot.lane.b32.xlu0 %v285_v48, %s3295_s0 }
 0x1e4   :  { %v288_v50 = vpop.permute.xlu0 %287 }
 0x1e5   :  { %v290_v51 = vadd.f32 %v288_v50, %v280_v49 }
 0x1e7   :  { %3170 = vtanh.f32 %v290_v51 }
 0x1f1   :  { %v3171_v58 = vpop.eup %3170 }
 0x1f2   :  { %293 = vrot.lane.b32.xlu1 %v3171_v58, %s3295_s0 }
 0x264   :  { %v294_v59 = vpop.permute.xlu1 %293 }
 0x265   :  { %v296_v60 = vmul.f32 %v3169_v46, %v294_v59 }
 0x267   :  { %304 = vrot.lane.b32.xlu1 %v296_v60, %s3296_s4 }
 0x2d9   :  { %v305_v61 = vpop.permute.xlu1 %304 }
 0x2da   :  { %2724 = vmatmul.mubr.msk.f32.vlgmr.msra.gmra.mrb[10].mxu0 %vm51_vm0, %v305_v61 }
 0x2db   :  { %3001 = vmatpush3.bf16.msra.mxu0 %v3375_v12  ;;  %2734 = vmatprep.mubr.msk.f32.mxu0 %vm3293_vm1, %v3294_v4 }
 0x2dc   :  { %3002 = vmatprep.subr.bf16.mxu0 %v3292_v3 }
 0x2df   :  { %3004 = vmatpush3.bf16.msra.mxu0 %v3393_v17 }
 0x2e0   :  { %3005 = vmatprep.subr.bf16.mxu0 %v3292_v3 }
 0x2e2   :  { %2735 = vmatmul.mubr.msk.f32.vlgmr.msra.gmra.mrb[12].mxu0 %vm51_vm0, %v305_v61 }
 0x2e3   :  { %3007 = vmatpush3.bf16.msra.mxu0 %v3448_v55  ;;  %2745 = vmatprep.mubr.msk.f32.mxu0 %vm3293_vm1, %v3294_v4 }
 0x2e4   :  { %3008 = vmatprep.subr.bf16.mxu0 %v3292_v3 }
 0x2e7   :  { %3010 = vmatpush3.bf16.msra.mxu0 %v3454_v57 }
 0x2e8   :  { %3011 = vmatprep.subr.bf16.mxu0 %v3292_v3 }
 0x3ad   :  { %v3479_v62 = vpop.f32.mrb[10].mxu0 }
 0x3ae   :  { %v2725_v63 = vpop.f32.mrb[11].mxu0 }
 0x3b5   :  { %v447_v0 = vpop.f32.mrb[12].mxu0 }
 0x3b6   :  { %v451_v1 = vadd.f32 %v447_v0, %v3423_v24  ;;  %v2736_v2 = vpop.f32.mrb[13].mxu0 }
 0x3b8   :  { %3172 = vtanh.f32 %v451_v1  ;;  %v2510_v6 = vmul.f32 -1.442695, %v451_v1 }
 0x3ba   :  { %3174 = vpow2.f32 %v2510_v6 }
 0x3c2   :  { %v3173_v5 = vpop.eup %3172 }
 0x3c3   :  { %461 = vrot.lane.b32.xlu0 %v3173_v5, %s3295_s0 }
 0x3c4   :  { %v3175_v7 = vpop.eup %3174 }
 0x3c5   :  { %v455_v8 = vadd.f32 1.0, %v3175_v7 }
 0x3c7   :  { %3176 = vrcp.f32 %v455_v8 }
 0x3d1   :  { %v3177_v9 = vpop.eup %3176 }
 0x3d2   :  { %v459_v13 = vmul.f32 %v3177_v9, %v290_v51 }
 0x435   :  { %v462_v10 = vpop.permute.xlu0 %461 }
 0x436   :  { %v464_v11 = vmul.f32 %v3177_v9, %v462_v10 }
 0x438   :  { %466 = vrot.lane.b32.xlu1 %v464_v11, %s3295_s0 }
 0x4aa   :  { %v467_v14 = vpop.permute.xlu1 %466 }
 0x4ab   :  { %v469_v15 = vadd.f32 %v467_v14, %v459_v13 }
 0x4ad   :  { %3178 = vtanh.f32 %v469_v15 }
 0x4b7   :  { %v3179_v16 = vpop.eup %3178 }
 0x4b8   :  { %472 = vrot.lane.b32.xlu0 %v3179_v16, %s3295_s0 }
 0x52a   :  { %v473_v18 = vpop.permute.xlu0 %472 }
 0x52b   :  { %v475_v19 = vmul.f32 %v3177_v9, %v473_v18 }
 0x52d   :  { %477 = vrot.lane.b32.xlu1 %v475_v19, %s3296_s4 }
 0x59f   :  { %v478_v20 = vpop.permute.xlu1 %477 }
 0x5a0   :  { %2746 = vmatmul.mubr.msk.f32.vlgmr.msra.gmra.mrb[14].mxu0 %vm51_vm0, %v478_v20 }
 0x5a1   :  { %3013 = vmatpush3.bf16.msra.mxu0 %v3375_v12  ;;  %2756 = vmatprep.mubr.msk.f32.mxu0 %vm3293_vm1, %v3294_v4 }
 0x5a2   :  { %3014 = vmatprep.subr.bf16.mxu0 %v3292_v3 }
 0x5a5   :  { %3016 = vmatpush3.bf16.msra.mxu0 %v3393_v17 }
 0x5a6   :  { %3023 = vmatprep.subr.bf16.mxu0 %v3292_v3 }
 0x5a8   :  { %2757 = vmatmul.mubr.msk.f32.vlgmr.msra.gmra.mrb[16].mxu0 %vm51_vm0, %v478_v20 }
 0x5a9   :  { %3025 = vmatpush3.bf16.msra.mxu0 %v3375_v12  ;;  %2778 = vmatprep.mubr.msk.f32.mxu0 %vm3293_vm1, %v3294_v4 }
 0x5aa   :  { %3026 = vmatprep.subr.bf16.mxu0 %v3292_v3 }
 0x5ad   :  { %3028 = vmatpush3.bf16.msra.mxu0 %v3393_v17 }
 0x5ae   :  { %3035 = vmatprep.subr.bf16.mxu0 %v3292_v3 }
 0x673   :  { %v3500_v21 = vpop.f32.mrb[14].mxu0 }
 0x674   :  { %v2747_v22 = vpop.f32.mrb[15].mxu0 }
 0x67b   :  { %v621_v23 = vpop.f32.mrb[16].mxu0 }
 0x67c   :  { %v625_v24 = vadd.f32 %v621_v23, %v3427_v29  ;;  %v2758_v25 = vpop.f32.mrb[17].mxu0 }
 0x67e   :  { %3180 = vtanh.f32 %v625_v24  ;;  %v2513_v28 = vmul.f32 -1.442695, %v625_v24 }
 0x680   :  { %3182 = vpow2.f32 %v2513_v28 }
 0x688   :  { %v3181_v26 = vpop.eup %3180 }
 0x689   :  { %635 = vrot.lane.b32.xlu0 %v3181_v26, %s3295_s0 }
 0x68a   :  { %v3183_v30 = vpop.eup %3182 }
 0x68b   :  { %v629_v32 = vadd.f32 1.0, %v3183_v30 }
 0x68d   :  { %3184 = vrcp.f32 %v629_v32 }
 0x697   :  { %v3185_v34 = vpop.eup %3184 }
 0x698   :  { %v633_v39 = vmul.f32 %v3185_v34, %v469_v15 }
 0x6fb   :  { %v636_v36 = vpop.permute.xlu0 %635 }
 0x6fc   :  { %v638_v38 = vmul.f32 %v3185_v34, %v636_v36 }
 0x6fe   :  { %640 = vrot.lane.b32.xlu1 %v638_v38, %s3295_s0 }
 0x770   :  { %v641_v40 = vpop.permute.xlu1 %640 }
 0x771   :  { %v643_v41 = vadd.f32 %v641_v40, %v633_v39 }
 0x773   :  { %3186 = vtanh.f32 %v643_v41 }
 0x77d   :  { %v3187_v29 = vpop.eup %3186 }
 0x77e   :  { %646 = vrot.lane.b32.xlu0 %v3187_v29, %s3295_s0 }
 0x7f0   :  { %v647_v42 = vpop.permute.xlu0 %646 }
 0x7f1   :  { %v649_v43 = vmul.f32 %v3185_v34, %v647_v42 }
 0x7f3   :  { %651 = vrot.lane.b32.xlu1 %v649_v43, %s3296_s4 }
 0x865   :  { %v652_v44 = vpop.permute.xlu1 %651 }
 0x866   :  { %2768 = vmatmul.mubr.msk.f32.vlgmr.msra.gmra.mrb[0].mxu1 %vm51_vm0, %v652_v44  ;;  %2779 = vmatmul.mubr.msk.f32.vlgmr.msra.gmra.mrb[18].mxu0 %vm51_vm0, %v652_v44 }
 0x867   :  { %3031 = vmatpush3.bf16.msra.mxu1 %v3448_v55  ;;  %3037 = vmatpush3.bf16.msra.mxu0 %v3375_v12 }
 0x868   :  { %3032 = vmatprep.subr.bf16.mxu1 %v3292_v3  ;;  %3038 = vmatprep.subr.bf16.mxu0 %v3292_v3 }
 0x869   :  { %2789 = vmatprep.mubr.msk.f32.mxu1 %vm3293_vm1, %v3294_v4  ;;  %2800 = vmatprep.mubr.msk.f32.mxu0 %vm3293_vm1, %v3294_v4 }
 0x86b   :  { %3034 = vmatpush3.bf16.msra.mxu1 %v3454_v57  ;;  %3040 = vmatpush3.bf16.msra.mxu0 %v3393_v17 }
 0x86c   :  { %3041 = vmatprep.subr.bf16.mxu1 %v3292_v3  ;;  %3047 = vmatprep.subr.bf16.mxu0 %v3292_v3 }
 0x939   :  { %v795_v45 = vpop.f32.mrb[18].mxu0 }
 0x93a   :  { %v799_v46 = vadd.f32 %v795_v45, %v3425_v27  ;;  %v2780_v47 = vpop.f32.mrb[19].mxu0 }
 0x93c   :  { %3188 = vtanh.f32 %v799_v46  ;;  %v2516_v49 = vmul.f32 -1.442695, %v799_v46 }
 0x93e   :  { %3190 = vpow2.f32 %v2516_v49 }
 0x946   :  { %v3189_v48 = vpop.eup %3188 }
 0x947   :  { %809 = vrot.lane.b32.xlu0 %v3189_v48, %s3295_s0 }
 0x948   :  { %v3191_v50 = vpop.eup %3190 }
 0x949   :  { %v803_v51 = vadd.f32 1.0, %v3191_v50 }
 0x94b   :  { %3192 = vrcp.f32 %v803_v51 }
 0x955   :  { %v3193_v52 = vpop.eup %3192 }
 0x956   :  { %v807_v56 = vmul.f32 %v3193_v52, %v643_v41 }
 0x9b9   :  { %v810_v53 = vpop.permute.xlu0 %809 }
 0x9ba   :  { %v812_v54 = vmul.f32 %v3193_v52, %v810_v53 }
 0x9bc   :  { %814 = vrot.lane.b32.xlu1 %v812_v54, %s3295_s0 }
 0xa2e   :  { %v815_v58 = vpop.permute.xlu1 %814 }
 0xa2f   :  { %v817_v59 = vadd.f32 %v815_v58, %v807_v56 }
 0xa31   :  { %3194 = vtanh.f32 %v817_v59 }
 0xa3b   :  { %v3195_v27 = vpop.eup %3194 }
 0xa3c   :  { %820 = vrot.lane.b32.xlu0 %v3195_v27, %s3295_s0 }
 0xaae   :  { %v821_v60 = vpop.permute.xlu0 %820 }
 0xaaf   :  { %v823_v61 = vmul.f32 %v3193_v52, %v821_v60 }
 0xab1   :  { %825 = vrot.lane.b32.xlu1 %v823_v61, %s3296_s4 }
 0xb23   :  { %v826_v63 = vpop.permute.xlu1 %825 }
 0xb24   :  { %2790 = vmatmul.mubr.msk.f32.vlgmr.msra.gmra.mrb[2].mxu1 %vm51_vm0, %v826_v63  ;;  %2801 = vmatmul.mubr.msk.f32.vlgmr.msra.gmra.mrb[20].mxu0 %vm51_vm0, %v826_v63 }
 0xb25   :  { %3043 = vmatpush3.bf16.msra.mxu1 %v3448_v55  ;;  %3049 = vmatpush3.bf16.msra.mxu0 %v3375_v12 }
 0xb26   :  { %3044 = vmatprep.subr.bf16.mxu1 %v3292_v3  ;;  %3050 = vmatprep.subr.bf16.mxu0 %v3292_v3 }
 0xb27   :  { %2811 = vmatprep.mubr.msk.f32.mxu1 %vm3293_vm1, %v3294_v4  ;;  %2822 = vmatprep.mubr.msk.f32.mxu0 %vm3293_vm1, %v3294_v4 }
 0xb29   :  { %3046 = vmatpush3.bf16.msra.mxu1 %v3454_v57  ;;  %3052 = vmatpush3.bf16.msra.mxu0 %v3393_v17 }
 0xb2a   :  { %3053 = vmatprep.subr.bf16.mxu1 %v3292_v3  ;;  %3059 = vmatprep.subr.bf16.mxu0 %v3292_v3 }
 0xbf7   :  { %v969_v0 = vpop.f32.mrb[20].mxu0 }
 0xbf8   :  { %v973_v1 = vadd.f32 %v969_v0, %v3431_v33  ;;  %v2802_v2 = vpop.f32.mrb[21].mxu0 }
 0xbfa   :  { %3196 = vtanh.f32 %v973_v1  ;;  %v2519_v6 = vmul.f32 -1.442695, %v973_v1 }
 0xbfc   :  { %3198 = vpow2.f32 %v2519_v6 }
 0xc04   :  { %v3197_v5 = vpop.eup %3196 }
 0xc05   :  { %983 = vrot.lane.b32.xlu0 %v3197_v5, %s3295_s0 }
 0xc06   :  { %v3199_v7 = vpop.eup %3198 }
 0xc07   :  { %v977_v8 = vadd.f32 1.0, %v3199_v7 }
 0xc09   :  { %3200 = vrcp.f32 %v977_v8 }
 0xc13   :  { %v3201_v9 = vpop.eup %3200 }
 0xc14   :  { %v981_v13 = vmul.f32 %v3201_v9, %v817_v59 }
 0xc77   :  { %v984_v10 = vpop.permute.xlu0 %983 }
 0xc78   :  { %v986_v11 = vmul.f32 %v3201_v9, %v984_v10  ;;  %v1598_v10 = vld [vmem:[%s3742_s5 + $0x8] sm:$0xff] }
 0xc7a   :  { %988 = vrot.lane.b32.xlu1 %v986_v11, %s3295_s0 }
 0xcec   :  { %v989_v14 = vpop.permute.xlu1 %988 }
 0xced   :  { %v991_v15 = vadd.f32 %v989_v14, %v981_v13  ;;  %v1599_v13 = vld [vmem:[%s3742_s5 + $0x10] sm:$0xff]  ;;  %v1600_v14 = vld [vmem:[%s3742_s5 + $0x18] sm:$0xff] }
 0xcef   :  { %3202 = vtanh.f32 %v991_v15 }
 0xcf9   :  { %v3203_v33 = vpop.eup %3202 }
 0xcfa   :  { %994 = vrot.lane.b32.xlu0 %v3203_v33, %s3295_s0  ;;  %v3614_v33 = vpack.c.bf16 %v1600_v14, %v1599_v13 }
 0xd6c   :  { %v995_v16 = vpop.permute.xlu0 %994 }
 0xd6d   :  { %v997_v18 = vmul.f32 %v3201_v9, %v995_v16  ;;  %v1597_v9 = vld [vmem:[%s3742_s5] sm:$0xff] }
 0xd6e   :  { %v3604_v11 = vpack.c.bf16 %v1598_v10, %v1597_v9  ;;  %v3631_v16 = vld [vmem:[%s3743_s6] ss:$0 sm:$0xff] }
 0xd6f   :  { %999 = vrot.lane.b32.xlu1 %v997_v18, %s3296_s4  ;;  %v375_v18 = vadd.f32 %v3631_v16, %v3479_v62 }
 0xde1   :  { %v1000_v19 = vpop.permute.xlu1 %999 }
 0xde2   :  { %2812 = vmatmul.mubr.msk.f32.vlgmr.msra.gmra.mrb[4].mxu1 %vm51_vm0, %v1000_v19  ;;  %2823 = vmatmul.mubr.msk.f32.vlgmr.msra.gmra.mrb[22].mxu0 %vm51_vm0, %v1000_v19 }
 0xde3   :  { %3055 = vmatpush3.bf16.msra.mxu1 %v3448_v55  ;;  %3061 = vmatpush3.bf16.msra.mxu0 %v3375_v12 }
 0xde4   :  { %3056 = vmatprep.subr.bf16.mxu1 %v3292_v3  ;;  %3062 = vmatprep.subr.bf16.mxu0 %v3292_v3 }
 0xde5   :  { %2833 = vmatprep.mubr.msk.f32.mxu1 %vm3293_vm1, %v3294_v4  ;;  %2844 = vmatprep.mubr.msk.f32.mxu0 %vm3293_vm1, %v3294_v4 }
 0xde7   :  { %3058 = vmatpush3.bf16.msra.mxu1 %v3454_v57  ;;  %3064 = vmatpush3.bf16.msra.mxu0 %v3393_v17 }
 0xde8   :  { %3065 = vmatprep.subr.bf16.mxu1 %v3292_v3  ;;  %3071 = vmatprep.subr.bf16.mxu0 %v3292_v3 }
 0xeb5   :  { %v1143_v20 = vpop.f32.mrb[22].mxu0 }
 0xeb6   :  { %v1147_v22 = vadd.f32 %v1143_v20, %v3429_v31  ;;  %v2824_v23 = vpop.f32.mrb[23].mxu0 }
 0xeb8   :  { %3204 = vtanh.f32 %v1147_v22  ;;  %v2522_v25 = vmul.f32 -1.442695, %v1147_v22 }
 0xeba   :  { %3206 = vpow2.f32 %v2522_v25 }
 0xec2   :  { %v3205_v24 = vpop.eup %3204 }
 0xec3   :  { %1157 = vrot.lane.b32.xlu0 %v3205_v24, %s3295_s0 }
 0xec4   :  { %v3207_v26 = vpop.eup %3206 }
 0xec5   :  { %v1151_v28 = vadd.f32 1.0, %v3207_v26 }
 0xec7   :  { %3208 = vrcp.f32 %v1151_v28 }
 0xed1   :  { %v3209_v30 = vpop.eup %3208 }
 0xed2   :  { %v1155_v36 = vmul.f32 %v3209_v30, %v991_v15 }
 0xf35   :  { %v1158_v32 = vpop.permute.xlu0 %1157 }
 0xf36   :  { %v1160_v34 = vmul.f32 %v3209_v30, %v1158_v32 }
 0xf38   :  { %1162 = vrot.lane.b32.xlu1 %v1160_v34, %s3295_s0 }
 0xfaa   :  { %v1163_v38 = vpop.permute.xlu1 %1162 }
 0xfab   :  { %v1165_v39 = vadd.f32 %v1163_v38, %v1155_v36 }
 0xfad   :  { %3210 = vtanh.f32 %v1165_v39 }
 0xfb7   :  { %v3211_v31 = vpop.eup %3210 }
 0xfb8   :  { %1168 = vrot.lane.b32.xlu0 %v3211_v31, %s3295_s0 }
0x102a   :  { %v1169_v40 = vpop.permute.xlu0 %1168 }
0x102b   :  { %v1171_v41 = vmul.f32 %v3209_v30, %v1169_v40 }
0x102d   :  { %1173 = vrot.lane.b32.xlu1 %v1171_v41, %s3296_s4  ;;  %v548_v41 = vadd.f32 %v3631_v16, %v3500_v21 }
0x109f   :  { %v1174_v29 = vpop.permute.xlu1 %1173 }
0x10a0   :  { %2834 = vmatmul.mubr.msk.f32.vlgmr.msra.gmra.mrb[6].mxu1 %vm51_vm0, %v1174_v29  ;;  %2845 = vmatmul.mubr.msk.f32.vlgmr.msra.gmra.mrb[24].mxu0 %vm51_vm0, %v1174_v29 }
0x10a1   :  { %3067 = vmatpush3.bf16.msra.mxu1 %v3448_v55  ;;  %3073 = vmatpush3.bf16.msra.mxu0 %v3375_v12 }
0x10a2   :  { %3068 = vmatprep.subr.bf16.mxu1 %v3292_v3  ;;  %3074 = vmatprep.subr.bf16.mxu0 %v3292_v3 }
0x10a3   :  { %2855 = vmatprep.mubr.msk.f32.mxu1 %vm3293_vm1, %v3294_v4  ;;  %2866 = vmatprep.mubr.msk.f32.mxu0 %vm3293_vm1, %v3294_v4 }
0x10a5   :  { %3070 = vmatpush3.bf16.msra.mxu1 %v3454_v57  ;;  %3076 = vmatpush3.bf16.msra.mxu0 %v3393_v17 }
0x10a6   :  { %3077 = vmatprep.subr.bf16.mxu1 %v3292_v3  ;;  %3131 = vmatprep.subr.bf16.mxu0 %v3292_v3 }
0x1173   :  { %v1317_v42 = vpop.f32.mrb[24].mxu0 }
0x1174   :  { %v1321_v12 = vadd.f32 %v1317_v42, %v3435_v37  ;;  %v2846_v43 = vpop.f32.mrb[25].mxu0 }
0x1176   :  { %3212 = vtanh.f32 %v1321_v12  ;;  %v2525_v45 = vmul.f32 -1.442695, %v1321_v12 }
0x1178   :  { %3214 = vpow2.f32 %v2525_v45 }
0x1180   :  { %v3213_v44 = vpop.eup %3212 }
0x1181   :  { %1331 = vrot.lane.b32.xlu0 %v3213_v44, %s3295_s0 }
0x1182   :  { %v3215_v46 = vpop.eup %3214 }
0x1183   :  { %v1325_v47 = vadd.f32 1.0, %v3215_v46 }
0x1185   :  { %3216 = vrcp.f32 %v1325_v47 }
0x118f   :  { %v3217_v48 = vpop.eup %3216 }
0x1190   :  { %v1329_v50 = vmul.f32 %v3217_v48, %v1165_v39 }
0x11f3   :  { %v1332_v49 = vpop.permute.xlu0 %1331 }
0x11f4   :  { %v1334_v17 = vmul.f32 %v3217_v48, %v1332_v49 }
0x11f6   :  { %1336 = vrot.lane.b32.xlu1 %v1334_v17, %s3295_s0 }
0x1268   :  { %v1337_v51 = vpop.permute.xlu1 %1336 }
0x1269   :  { %v1339_v52 = vadd.f32 %v1337_v51, %v1329_v50 }
0x126b   :  { %3218 = vtanh.f32 %v1339_v52 }
0x1275   :  { %v3219_v37 = vpop.eup %3218 }
0x1276   :  { %1342 = vrot.lane.b32.xlu0 %v3219_v37, %s3295_s0 }
0x12e8   :  { %v1343_v53 = vpop.permute.xlu0 %1342 }
0x12e9   :  { %v1345_v54 = vmul.f32 %v3217_v48, %v1343_v53 }
0x12eb   :  { %1347 = vrot.lane.b32.xlu1 %v1345_v54, %s3296_s4 }
0x135d   :  { %v1348_v56 = vpop.permute.xlu1 %1347 }
0x135e   :  { %2856 = vmatmul.mubr.msk.f32.vlgmr.msra.gmra.mrb[8].mxu1 %vm51_vm0, %v1348_v56  ;;  %2867 = vmatmul.mubr.msk.f32.vlgmr.msra.gmra.mrb[26].mxu0 %vm51_vm0, %v1348_v56 }
0x135f   :  { %3079 = vmatpush3.bf16.msra.mxu1 %v3448_v55  ;;  %2877 = vmatprep.mubr.msk.f32.mxu1 %vm3293_vm1, %v3294_v4 }
0x1360   :  { %3080 = vmatprep.subr.bf16.mxu1 %v3292_v3  ;;  %2976 = vmatprep.mubr.msk.f32.mxu0 %vm3293_vm1, %v3294_v4 }
0x1363   :  { %3082 = vmatpush3.bf16.msra.mxu1 %v3454_v57 }
0x1364   :  { %3083 = vmatprep.subr.bf16.mxu1 %v3292_v3 }
0x1431   :  { %v1491_v58 = vpop.f32.mrb[26].mxu0 }
0x1432   :  { %v1495_v59 = vadd.f32 %v1491_v58, %v3433_v35  ;;  %v2868_v27 = vpop.f32.mrb[27].mxu0 }
0x1434   :  { %3220 = vtanh.f32 %v1495_v59  ;;  %v2528_v55 = vmul.f32 -1.442695, %v1495_v59 }
0x1436   :  { %3222 = vpow2.f32 %v2528_v55 }
0x143e   :  { %v3221_v60 = vpop.eup %3220 }
0x143f   :  { %1505 = vrot.lane.b32.xlu0 %v3221_v60, %s3295_s0 }
0x1440   :  { %v3223_v61 = vpop.eup %3222 }
0x1441   :  { %v1499_v63 = vadd.f32 1.0, %v3223_v61 }
0x1443   :  { %3224 = vrcp.f32 %v1499_v63 }
0x144d   :  { %v3225_v0 = vpop.eup %3224 }
0x144e   :  { %v1503_v57 = vmul.f32 %v3225_v0, %v1339_v52 }
0x14b1   :  { %v1506_v1 = vpop.permute.xlu0 %1505 }
0x14b2   :  { %v1508_v2 = vmul.f32 %v3225_v0, %v1506_v1 }
0x14b4   :  { %1510 = vrot.lane.b32.xlu1 %v1508_v2, %s3295_s0 }
0x1526   :  { %v1511_v5 = vpop.permute.xlu1 %1510 }
0x1527   :  { %v1513_v6 = vadd.f32 %v1511_v5, %v1503_v57 }
0x1529   :  { %3226 = vtanh.f32 %v1513_v6 }
0x1533   :  { %v3227_v35 = vpop.eup %3226 }
0x1534   :  { %1516 = vrot.lane.b32.xlu0 %v3227_v35, %s3295_s0 }
0x15a6   :  { %v1517_v7 = vpop.permute.xlu0 %1516 }
0x15a7   :  { %v1519_v8 = vmul.f32 %v3225_v0, %v1517_v7 }
0x15a9   :  { %1521 = vrot.lane.b32.xlu1 %v1519_v8, %s3296_s4 }
0x161b   :  { %v1522_v15 = vpop.permute.xlu1 %1521 }
0x161c   :  { %2878 = vmatmul.mubr.msk.f32.vlgmr.msra.gmra.mrb[10].mxu1 %vm51_vm0, %v1522_v15 }
0x161d   :  { %3085 = vmatpush3.bf16.msra.mxu1 %v3604_v11  ;;  %2888 = vmatprep.mubr.msk.f32.mxu1 %vm3293_vm1, %v3294_v4 }
0x161e   :  { %3086 = vmatprep.subr.bf16.mxu1 %v3292_v3 }
0x1621   :  { %3088 = vmatpush3.bf16.msra.mxu1 %v3614_v33 }
0x1622   :  { %3089 = vmatprep.subr.bf16.mxu1 %v3292_v3 }
0x1624   :  { %2889 = vmatmul.mubr.f32.vlgmr.msra.gmra.mrb[12].mxu1 %v3294_v4 }
0x1625   :  { %3091 = vmatpush3.bf16.msra.mxu1 %v3604_v11  ;;  %2899 = vmatprep.mubr.msk.f32.mxu1 %vm3293_vm1, %v3294_v4 }
0x1626   :  { %3092 = vmatprep.subr.bf16.mxu1 %v3292_v3 }
0x1629   :  { %3094 = vmatpush3.bf16.msra.mxu1 %v3614_v33 }
0x162a   :  { %3095 = vmatprep.subr.bf16.mxu1 %v3292_v3 }
0x16f7   :  { %v1668_v19 = vpop.f32.mrb[12].mxu1 }
0x16f8   :  { %v1672_v20 = vadd.f32 %v1668_v19, %v375_v18  ;;  %v2890_v22 = vpop.f32.mrb[13].mxu1 }
0x16fa   :  { %3228 = vtanh.f32 %v1672_v20  ;;  %v2530_v24 = vmul.f32 -1.442695, %v1672_v20 }
0x16fc   :  { %3230 = vpow2.f32 %v2530_v24 }
0x1704   :  { %v3229_v23 = vpop.eup %3228 }
0x1705   :  { %1682 = vrot.lane.b32.xlu0 %v3229_v23, %s3295_s0 }
0x1706   :  { %v3231_v25 = vpop.eup %3230 }
0x1707   :  { %v1676_v26 = vadd.f32 1.0, %v3231_v25 }
0x1709   :  { %3232 = vrcp.f32 %v1676_v26 }
0x1713   :  { %v3233_v28 = vpop.eup %3232 }
0x1714   :  { %v1680_v34 = vmul.f32 0.0, %v3233_v28 }
0x1777   :  { %v1683_v30 = vpop.permute.xlu0 %1682 }
0x1778   :  { %v1685_v32 = vmul.f32 %v3233_v28, %v1683_v30 }
0x177a   :  { %1687 = vrot.lane.b32.xlu1 %v1685_v32, %s3295_s0 }
0x17ec   :  { %v1688_v36 = vpop.permute.xlu1 %1687 }
0x17ed   :  { %v1690_v62 = vadd.f32 %v1688_v36, %v1680_v34 }
0x17ef   :  { %3234 = vtanh.f32 %v1690_v62 }
0x17f9   :  { %v3235_v38 = vpop.eup %3234 }
0x17fa   :  { %1693 = vrot.lane.b32.xlu0 %v3235_v38, %s3295_s0 }
0x186c   :  { %v1694_v39 = vpop.permute.xlu0 %1693 }
0x186d   :  { %v1696_v31 = vmul.f32 %v3233_v28, %v1694_v39 }
0x186f   :  { %1699 = vrot.lane.b32.xlu1 %v1696_v31, %s3296_s4 }
0x18e1   :  { %v1700_v40 = vpop.permute.xlu1 %1699 }
0x18e2   :  { %2900 = vmatmul.mubr.msk.f32.vlgmr.msra.gmra.mrb[14].mxu1 %vm51_vm0, %v1700_v40 }
0x18e3   :  { %3097 = vmatpush3.bf16.msra.mxu1 %v3604_v11  ;;  %2910 = vmatprep.mubr.msk.f32.mxu1 %vm3293_vm1, %v3294_v4 }
0x18e4   :  { %3098 = vmatprep.subr.bf16.mxu1 %v3292_v3 }
0x18e7   :  { %3100 = vmatpush3.bf16.msra.mxu1 %v3614_v33 }
0x18e8   :  { %3101 = vmatprep.subr.bf16.mxu1 %v3292_v3 }
0x19b5   :  { %v1769_v29 = vpop.f32.mrb[14].mxu1 }
0x19b6   :  { %v1773_v42 = vadd.f32 %v1769_v29, %v548_v41  ;;  %v2901_v12 = vpop.f32.mrb[15].mxu1 }
0x19b8   :  { %3236 = vtanh.f32 %v1773_v42  ;;  %v2532_v44 = vmul.f32 -1.442695, %v1773_v42 }
0x19ba   :  { %3238 = vpow2.f32 %v2532_v44 }
0x19c2   :  { %v3237_v43 = vpop.eup %3236 }
0x19c3   :  { %1783 = vrot.lane.b32.xlu0 %v3237_v43, %s3295_s0 }
0x19c4   :  { %v3239_v45 = vpop.eup %3238 }
0x19c5   :  { %v1777_v46 = vadd.f32 1.0, %v3239_v45 }
0x19c7   :  { %3240 = vrcp.f32 %v1777_v46 }
0x19d1   :  { %v3241_v47 = vpop.eup %3240 }
0x19d2   :  { %v1781_v17 = vmul.f32 %v3241_v47, %v1690_v62 }
0x1a35   :  { %v1784_v48 = vpop.permute.xlu0 %1783 }
0x1a36   :  { %v1786_v49 = vmul.f32 %v3241_v47, %v1784_v48 }
0x1a38   :  { %1788 = vrot.lane.b32.xlu1 %v1786_v49, %s3295_s0 }
0x1aaa   :  { %v1789_v50 = vpop.permute.xlu1 %1788 }
0x1aab   :  { %v1791_v21 = vadd.f32 %v1789_v50, %v1781_v17 }
0x1aad   :  { %3242 = vtanh.f32 %v1791_v21 }
0x1ab7   :  { %v3243_v51 = vpop.eup %3242 }
0x1ab8   :  { %1794 = vrot.lane.b32.xlu0 %v3243_v51, %s3295_s0 }
0x1b2a   :  { %v1795_v52 = vpop.permute.xlu0 %1794 }
0x1b2b   :  { %v1797_v37 = vmul.f32 %v3241_v47, %v1795_v52 }
0x1b2d   :  { %1800 = vrot.lane.b32.xlu1 %v1797_v37, %s3296_s4 }
0x1b9f   :  { %v1801_v53 = vpop.permute.xlu1 %1800 }
0x1ba0   :  { %2911 = vmatmul.mubr.msk.f32.vlgmr.msra.gmra.mrb[0].mxu1 %vm51_vm0, %v1801_v53 }
0x1ba1   :  { %3103 = vmatpush3.bf16.msra.mxu1 %v3604_v11  ;;  %2921 = vmatprep.mubr.msk.f32.mxu1 %vm3293_vm1, %v3294_v4 }
0x1ba2   :  { %3104 = vmatprep.subr.bf16.mxu1 %v3292_v3 }
0x1ba5   :  { %3106 = vmatpush3.bf16.msra.mxu1 %v3614_v33 }
0x1ba6   :  { %3107 = vmatprep.subr.bf16.mxu1 %v3292_v3 }
0x1c73   :  { %v1870_v54 = vpop.f32.mrb[0].mxu1 }
0x1c74   :  { %v3141_v56 = vadd.f32 %v3631_v16, %v1870_v54  ;;  %v2912_v58 = vpop.f32.mrb[1].mxu1 }
0x1c76   :  { %3244 = vtanh.f32 %v3141_v56  ;;  %v2534_v27 = vmul.f32 -1.442695, %v3141_v56 }
0x1c78   :  { %3246 = vpow2.f32 %v2534_v27 }
0x1c80   :  { %v3245_v59 = vpop.eup %3244 }
0x1c81   :  { %1884 = vrot.lane.b32.xlu0 %v3245_v59, %s3295_s0 }
0x1c82   :  { %v3247_v60 = vpop.eup %3246 }
0x1c83   :  { %v1878_v55 = vadd.f32 1.0, %v3247_v60 }
0x1c85   :  { %3248 = vrcp.f32 %v1878_v55 }
0x1c8f   :  { %v3249_v61 = vpop.eup %3248 }
0x1c90   :  { %v1882_v1 = vmul.f32 %v3249_v61, %v1791_v21 }
0x1cf3   :  { %v1885_v63 = vpop.permute.xlu0 %1884 }
0x1cf4   :  { %v1887_v0 = vmul.f32 %v3249_v61, %v1885_v63 }
0x1cf6   :  { %1889 = vrot.lane.b32.xlu1 %v1887_v0, %s3295_s0 }
0x1d68   :  { %v1890_v2 = vpop.permute.xlu1 %1889 }
0x1d69   :  { %v1892_v57 = vadd.f32 %v1890_v2, %v1882_v1 }
0x1d6b   :  { %3250 = vtanh.f32 %v1892_v57 }
0x1d75   :  { %v3251_v5 = vpop.eup %3250 }
0x1d76   :  { %1895 = vrot.lane.b32.xlu0 %v3251_v5, %s3295_s0 }
0x1de8   :  { %v1896_v6 = vpop.permute.xlu0 %1895 }
0x1de9   :  { %v1898_v35 = vmul.f32 %v3249_v61, %v1896_v6 }
0x1deb   :  { %1901 = vrot.lane.b32.xlu1 %v1898_v35, %s3296_s4 }
0x1e5d   :  { %v1902_v7 = vpop.permute.xlu1 %1901 }
0x1e5e   :  { %2922 = vmatmul.mubr.msk.f32.vlgmr.msra.gmra.mrb[2].mxu1 %vm51_vm0, %v1902_v7 }
0x1e5f   :  { %3109 = vmatpush3.bf16.msra.mxu1 %v3604_v11  ;;  %2932 = vmatprep.mubr.msk.f32.mxu1 %vm3293_vm1, %v3294_v4 }
0x1e60   :  { %3110 = vmatprep.subr.bf16.mxu1 %v3292_v3 }
0x1e63   :  { %3112 = vmatpush3.bf16.msra.mxu1 %v3614_v33 }
0x1e64   :  { %3113 = vmatprep.subr.bf16.mxu1 %v3292_v3 }
0x1f31   :  { %v1971_v8 = vpop.f32.mrb[2].mxu1 }
0x1f32   :  { %v3142_v9 = vadd.f32 %v3631_v16, %v1971_v8  ;;  %v2923_v10 = vpop.f32.mrb[3].mxu1 }
0x1f34   :  { %3252 = vtanh.f32 %v3142_v9  ;;  %v2536_v14 = vmul.f32 -1.442695, %v3142_v9 }
0x1f36   :  { %3254 = vpow2.f32 %v2536_v14 }
0x1f3e   :  { %v3253_v13 = vpop.eup %3252 }
0x1f3f   :  { %1985 = vrot.lane.b32.xlu0 %v3253_v13, %s3295_s0 }
0x1f40   :  { %v3255_v15 = vpop.eup %3254 }
0x1f41   :  { %v1979_v18 = vadd.f32 1.0, %v3255_v15 }
0x1f43   :  { %3256 = vrcp.f32 %v1979_v18 }
0x1f4d   :  { %v3257_v19 = vpop.eup %3256 }
0x1f4e   :  { %v1983_v23 = vmul.f32 %v3257_v19, %v1892_v57 }
0x1fb1   :  { %v1986_v20 = vpop.permute.xlu0 %1985 }
0x1fb2   :  { %v1988_v22 = vmul.f32 %v3257_v19, %v1986_v20 }
0x1fb4   :  { %1990 = vrot.lane.b32.xlu1 %v1988_v22, %s3295_s0 }
0x2026   :  { %v1991_v24 = vpop.permute.xlu1 %1990 }
0x2027   :  { %v1993_v25 = vadd.f32 %v1991_v24, %v1983_v23 }
0x2029   :  { %3258 = vtanh.f32 %v1993_v25 }
0x2033   :  { %v3259_v26 = vpop.eup %3258 }
0x2034   :  { %1996 = vrot.lane.b32.xlu0 %v3259_v26, %s3295_s0 }
0x20a6   :  { %v1997_v28 = vpop.permute.xlu0 %1996 }
0x20a7   :  { %v1999_v30 = vmul.f32 %v3257_v19, %v1997_v28 }
0x20a9   :  { %2002 = vrot.lane.b32.xlu1 %v1999_v30, %s3296_s4 }
0x211b   :  { %v2003_v32 = vpop.permute.xlu1 %2002 }
0x211c   :  { %2933 = vmatmul.mubr.msk.f32.vlgmr.msra.gmra.mrb[4].mxu1 %vm51_vm0, %v2003_v32 }
0x211d   :  { %3115 = vmatpush3.bf16.msra.mxu1 %v3604_v11  ;;  %2943 = vmatprep.mubr.msk.f32.mxu1 %vm3293_vm1, %v3294_v4 }
0x211e   :  { %3116 = vmatprep.subr.bf16.mxu1 %v3292_v3 }
0x2121   :  { %3118 = vmatpush3.bf16.msra.mxu1 %v3614_v33 }
0x2122   :  { %3119 = vmatprep.subr.bf16.mxu1 %v3292_v3 }
0x21ef   :  { %v2072_v34 = vpop.f32.mrb[4].mxu1 }
0x21f0   :  { %v3143_v36 = vadd.f32 %v3631_v16, %v2072_v34  ;;  %v2934_v62 = vpop.f32.mrb[5].mxu1 }
0x21f1   :  { %v2405_v62 = vld [vmem:[%s3744_s7 + $0x8] sm:$0xff] }
0x21f2   :  { %3260 = vtanh.f32 %v3143_v36  ;;  %v2538_v39 = vmul.f32 -1.442695, %v3143_v36 }
0x21f4   :  { %3262 = vpow2.f32 %v2538_v39 }
0x21fc   :  { %v3261_v38 = vpop.eup %3260 }
0x21fd   :  { %2086 = vrot.lane.b32.xlu0 %v3261_v38, %s3295_s0  ;;  %v2406_v38 = vld [vmem:[%s3744_s7 + $0x10] sm:$0xff] }
0x21fe   :  { %v3263_v31 = vpop.eup %3262 }
0x21ff   :  { %v2080_v40 = vadd.f32 1.0, %v3263_v31  ;;  %v2407_v31 = vld [vmem:[%s3744_s7 + $0x18] sm:$0xff] }
0x2201   :  { %3264 = vrcp.f32 %v2080_v40  ;;  %v3135_v40 = vpack.c.bf16 %v2407_v31, %v2406_v38 }
0x220b   :  { %v3265_v41 = vpop.eup %3264 }
0x220c   :  { %v2084_v12 = vmul.f32 %v3265_v41, %v1993_v25 }
0x226f   :  { %v2087_v29 = vpop.permute.xlu0 %2086 }
0x2270   :  { %v2089_v42 = vmul.f32 %v3265_v41, %v2087_v29 }
0x2272   :  { %2091 = vrot.lane.b32.xlu1 %v2089_v42, %s3295_s0 }
0x22e4   :  { %v2092_v43 = vpop.permute.xlu1 %2091 }
0x22e5   :  { %v2094_v44 = vadd.f32 %v2092_v43, %v2084_v12  ;;  %v2545_v43 = vld [vmem:[%s3745_s8] ss:$0 sm:$0xff] }
0x22e7   :  { %3266 = vtanh.f32 %v2094_v44 }
0x22f1   :  { %v3267_v45 = vpop.eup %3266 }
0x22f2   :  { %2097 = vrot.lane.b32.xlu0 %v3267_v45, %s3295_s0 }
0x2364   :  { %v2098_v46 = vpop.permute.xlu0 %2097 }
0x2365   :  { %v2100_v47 = vmul.f32 %v3265_v41, %v2098_v46 }
0x2367   :  { %2103 = vrot.lane.b32.xlu1 %v2100_v47, %s3296_s4 }
0x23d9   :  { %v2104_v48 = vpop.permute.xlu1 %2103 }
0x23da   :  { %2944 = vmatmul.mubr.msk.f32.vlgmr.msra.gmra.mrb[6].mxu1 %vm51_vm0, %v2104_v48 }
0x23db   :  { %3121 = vmatpush3.bf16.msra.mxu1 %v3604_v11  ;;  %2954 = vmatprep.mubr.msk.f32.mxu1 %vm3293_vm1, %v3294_v4 }
0x23dc   :  { %3122 = vmatprep.subr.bf16.mxu1 %v3292_v3 }
0x23df   :  { %3124 = vmatpush3.bf16.msra.mxu1 %v3614_v33 }
0x23e0   :  { %3125 = vmatprep.subr.bf16.mxu1 %v3292_v3 }
0x24ad   :  { %v2173_v49 = vpop.f32.mrb[6].mxu1 }
0x24ae   :  { %v3144_v17 = vadd.f32 %v3631_v16, %v2173_v49  ;;  %v2945_v50 = vpop.f32.mrb[7].mxu1 }
0x24b0   :  { %3268 = vtanh.f32 %v3144_v17  ;;  %v2540_v51 = vmul.f32 -1.442695, %v3144_v17 }
0x24b2   :  { %3270 = vpow2.f32 %v2540_v51 }
0x24ba   :  { %v3269_v21 = vpop.eup %3268 }
0x24bb   :  { %2187 = vrot.lane.b32.xlu0 %v3269_v21, %s3295_s0 }
0x24bc   :  { %v3271_v52 = vpop.eup %3270 }
0x24bd   :  { %v2181_v37 = vadd.f32 1.0, %v3271_v52 }
0x24bf   :  { %3272 = vrcp.f32 %v2181_v37 }
0x24c9   :  { %v3273_v53 = vpop.eup %3272 }
0x24ca   :  { %v2185_v58 = vmul.f32 %v3273_v53, %v2094_v44 }
0x252d   :  { %v2188_v54 = vpop.permute.xlu0 %2187 }
0x252e   :  { %v2190_v56 = vmul.f32 %v3273_v53, %v2188_v54 }
0x2530   :  { %2192 = vrot.lane.b32.xlu1 %v2190_v56, %s3295_s0 }
0x25a2   :  { %v2193_v59 = vpop.permute.xlu1 %2192 }
0x25a3   :  { %v2195_v27 = vadd.f32 %v2193_v59, %v2185_v58 }
0x25a5   :  { %3274 = vtanh.f32 %v2195_v27 }
0x25af   :  { %v3275_v60 = vpop.eup %3274 }
0x25b0   :  { %2198 = vrot.lane.b32.xlu0 %v3275_v60, %s3295_s0 }
0x2622   :  { %v2199_v55 = vpop.permute.xlu0 %2198 }
0x2623   :  { %v2201_v61 = vmul.f32 %v3273_v53, %v2199_v55 }
0x2625   :  { %2204 = vrot.lane.b32.xlu1 %v2201_v61, %s3296_s4 }
0x2697   :  { %v2205_v63 = vpop.permute.xlu1 %2204 }
0x2698   :  { %2955 = vmatmul.mubr.msk.f32.vlgmr.msra.gmra.mrb[8].mxu1 %vm51_vm0, %v2205_v63 }
0x2699   :  { %3127 = vmatpush3.bf16.msra.mxu1 %v3604_v11  ;;  %2965 = vmatprep.mubr.msk.f32.mxu1 %vm3293_vm1, %v3294_v4 }
0x269a   :  { %3128 = vmatprep.subr.bf16.mxu1 %v3292_v3 }
0x269d   :  { %3130 = vmatpush3.bf16.msra.mxu1 %v3614_v33 }
0x276b   :  { %v2274_v0 = vpop.f32.mrb[8].mxu1 }
0x276c   :  { %v3145_v1 = vadd.f32 %v3631_v16, %v2274_v0  ;;  %v2956_v2 = vpop.f32.mrb[9].mxu1 }
0x276e   :  { %3276 = vtanh.f32 %v3145_v1  ;;  %v2542_v5 = vmul.f32 -1.442695, %v3145_v1 }
0x2770   :  { %3278 = vpow2.f32 %v2542_v5 }
0x2778   :  { %v3277_v57 = vpop.eup %3276 }
0x2779   :  { %2288 = vrot.lane.b32.xlu0 %v3277_v57, %s3295_s0 }
0x277a   :  { %v3279_v6 = vpop.eup %3278 }
0x277b   :  { %v2282_v35 = vadd.f32 1.0, %v3279_v6 }
0x277d   :  { %3280 = vrcp.f32 %v2282_v35 }
0x2787   :  { %v3281_v11 = vpop.eup %3280 }
0x2788   :  { %v2286_v8 = vmul.f32 %v3281_v11, %v2195_v27 }
0x27eb   :  { %v2289_v7 = vpop.permute.xlu0 %2288 }
0x27ec   :  { %v2291_v4 = vmul.f32 %v3281_v11, %v2289_v7 }
0x27ee   :  { %2293 = vrot.lane.b32.xlu1 %v2291_v4, %s3295_s0 }
0x2860   :  { %v2294_v33 = vpop.permute.xlu1 %2293 }
0x2861   :  { %v2296_v9 = vadd.f32 %v2294_v33, %v2286_v8 }
0x2863   :  { %3282 = vtanh.f32 %v2296_v9 }
0x286d   :  { %v3283_v10 = vpop.eup %3282 }
0x286e   :  { %2299 = vrot.lane.b32.xlu0 %v3283_v10, %s3295_s0 }
0x28e0   :  { %v2300_v13 = vpop.permute.xlu0 %2299 }
0x28e1   :  { %v2302_v14 = vmul.f32 %v3281_v11, %v2300_v13 }
0x28e3   :  { %2305 = vrot.lane.b32.xlu1 %v2302_v14, %s3296_s4 }
0x2955   :  { %v2306_v15 = vpop.permute.xlu1 %2305 }
0x2956   :  { %2966 = vmatmul.mubr.msk.f32.vlgmr.msra.gmra.mrb[10].mxu1 %vm51_vm0, %v2306_v15 }
0x2a29   :  { %v2375_v18 = vpop.f32.mrb[10].mxu1 }
0x2a2a   :  { %v3146_v19 = vadd.f32 %v3631_v16, %v2375_v18  ;;  %v2967_v20 = vpop.f32.mrb[11].mxu1  ;;  %v2404_v16 = vld [vmem:[%s3744_s7] sm:$0xff] }
0x2a2b   :  { %v3132_v39 = vpack.c.bf16 %v2405_v62, %v2404_v16 }
0x2a2c   :  { %3284 = vtanh.f32 %v3146_v19  ;;  %v2544_v23 = vmul.f32 -1.442695, %v3146_v19 }
0x2a2d   :  { %3133 = vmatpush3.bf16.msra.mxu0 %v3132_v39 }
0x2a2e   :  { %3286 = vpow2.f32 %v2544_v23  ;;  %3134 = vmatprep.subr.bf16.mxu0 %v3292_v3 }
0x2a31   :  { %3136 = vmatpush3.bf16.msra.mxu0 %v3135_v40 }
0x2a36   :  { %v3285_v22 = vpop.eup %3284 }
0x2a37   :  { %2389 = vrot.lane.b32.xlu0 %v3285_v22, %s3295_s0 }
0x2a38   :  { %v3287_v24 = vpop.eup %3286 }
0x2a39   :  { %v2383_v25 = vadd.f32 1.0, %v3287_v24 }
0x2a3b   :  { %3288 = vrcp.f32 %v2383_v25 }
0x2a45   :  { %v3289_v26 = vpop.eup %3288 }
0x2a46   :  { %v2387_v32 = vmul.f32 %v3289_v26, %v2296_v9 }
0x2aa9   :  { %v2390_v28 = vpop.permute.xlu0 %2389 }
0x2aaa   :  { %v2392_v30 = vmul.f32 %v3289_v26, %v2390_v28 }
0x2aac   :  { %2394 = vrot.lane.b32.xlu1 %v2392_v30, %s3295_s0 }
0x2b1e   :  { %v2395_v34 = vpop.permute.xlu1 %2394 }
0x2b1f   :  { %v2397_v36 = vadd.f32 %v2395_v34, %v2387_v32 }
0x2b21   :  { %3290 = vtanh.f32 %v2397_v36 }
0x2b2b   :  { %v3291_v41 = vpop.eup %3290 }
0x2b2c   :  { %2400 = vrot.lane.b32.xlu0 %v3291_v41, %s3295_s0 }
0x2b9e   :  { %v2401_v29 = vpop.permute.xlu0 %2400 }
0x2b9f   :  { %v2403_v42 = vmul.f32 %v3289_v26, %v2401_v29 }
0x2ba1   :  { %2416 = vrot.lane.b32.xlu1 %v2403_v42, %s3296_s4 }
0x2c13   :  { %v2417_v12 = vpop.permute.xlu1 %2416 }
0x2c14   :  { %2977 = vmatmul.mubr.msk.f32.vlgmr.msra.gmra.mrb[28].mxu0 %vm51_vm0, %v2417_v12 }
0x2ce7   :  { %v2486_v44 = vpop.f32.mrb[28].mxu0 }
0x2ce8   :  { %v2487_v45 = vadd.f32 %v2545_v43, %v2486_v44  ;;  %v2978_v46 = vpop.f32.mrb[29].mxu0 }
0x2cea   :  { %v2490_v3 = vmax.f32 %v2487_v45, 0.0 }
0x2cec   :  { %2492 = vst.msk [vmem:[%s3746_s9] sm:$0xff] %vm2491_vm2, %v2490_v3 }

</bundles_post_ra>
